<compile_context>
chip_gen: v6e
topology: v6e:2x2x1
jax: 0.10.0
libtpu: 0.0.40
codegen_flags: <defaults>
</compile_context>

<pallas_src>
import functools

import jax
import jax.numpy as jnp
from jax.experimental import pallas as pl
from jax.experimental.pallas import tpu as pltpu


def _round_up(n, m):
    return ((n + m - 1) // m) * m


# ---------------------------------------------------------------------------
# Kernel: fused MLP on one batch tile.  bf16 MXU operands, fp32 accumulation,
# fp32 bias-add + ReLU on the VPU.
# ---------------------------------------------------------------------------
def mlp_kernel(x_ref, w1_ref, b1_ref, w2_ref, b2_ref, w3_ref, b3_ref, o_ref):
    x = x_ref[...].astype(jnp.bfloat16)              # in-kernel cast (opt 2)
    # layer 1: Linear(input_size -> nf) + ReLU
    h1 = jnp.dot(x, w1_ref[...], preferred_element_type=jnp.float32)
    h1 = jnp.maximum(h1 + b1_ref[...], 0.0)
    # layer 2: Linear(nf -> nf) + ReLU
    h2 = jnp.dot(h1.astype(jnp.bfloat16), w2_ref[...],
                 preferred_element_type=jnp.float32)
    h2 = jnp.maximum(h2 + b2_ref[...], 0.0)
    # layer 3: Linear(nf -> out), no activation
    out = jnp.dot(h2.astype(jnp.bfloat16), w3_ref[...],
                  preferred_element_type=jnp.float32)
    o_ref[...] = (out + b3_ref[...]).astype(o_ref.dtype)


# ---------------------------------------------------------------------------
# One-time weight packing (opt 1): zero-pad to 128-aligned fan_in/fan_out and
# cast weights to bf16.  Call once at init; the result is reused every call.
# ---------------------------------------------------------------------------
def pack_params(params):
    w1, b1, w2, b2, w3, b3 = params
    in_size, nf = w1.shape
    out_size = w3.shape[1]
    in_pad = _round_up(in_size, 128)
    nf_pad = _round_up(nf, 128)            # 400 -> 512, unconditional (opt 7)
    out_pad = _round_up(out_size, 128)     # lane-dense output stores

    def pad_w(w, rows, cols):
        w = jnp.pad(w, ((0, rows - w.shape[0]), (0, cols - w.shape[1])))
        return w.astype(jnp.bfloat16)      # halve weight DMA bytes

    def pad_b(b, cols):
        b = jnp.asarray(b, jnp.float32).reshape(1, -1)
        return jnp.pad(b, ((0, 0), (0, cols - b.shape[1])))

    return (pad_w(w1, in_pad, nf_pad), pad_b(b1, nf_pad),
            pad_w(w2, nf_pad, nf_pad), pad_b(b2, nf_pad),
            pad_w(w3, nf_pad, out_pad), pad_b(b3, out_pad))


# ---------------------------------------------------------------------------
# Batch-tile chooser (opts 3/6/8): minimize padded rows, then prefer >=2 grid
# steps (v7x megacore), then prefer the largest tile.
# ---------------------------------------------------------------------------
def _choose_batch_tiling(B, batch_tile):
    b_pad = _round_up(max(B, 1), 8)        # f32 sublane multiple
    if b_pad <= 64:                        # tiny batch: one small tile
        return b_pad, b_pad
    cands = set(t for t in (64, 128, 256, 512, 1024) if t <= batch_tile)
    if b_pad <= batch_tile:
        cands.add(b_pad)                   # exact-fit single tile (zero waste)
    best = None
    for t in sorted(cands):
        padded = _round_up(b_pad, t)
        steps = padded // t
        key = (padded - b_pad, 0 if steps >= 2 else 1, -t)
        if best is None or key < best[0]:
            best = (key, t, padded)
    _, tb, padded = best
    return padded, tb


def mlp_forward(x, packed, *, out_size, batch_tile=512):
    """x: (B, ...) float32, flattened to (B, input_size).
    packed: output of pack_params().  Returns (B, out_size) float32."""
    w1p, b1p, w2p, b2p, w3p, b3p = packed
    B = x.shape[0]
    x2d = x.reshape(B, -1).astype(jnp.float32)       # torch .view(-1, input_size)
    in_size = x2d.shape[1]
    in_pad = w1p.shape[0]
    nf_pad = w1p.shape[1]
    out_pad = w3p.shape[1]

    b_pad, tb = _choose_batch_tiling(B, batch_tile)
    grid = (b_pad // tb,)

    pad_rows = b_pad - B
    pad_cols = in_pad - in_size
    if pad_rows or pad_cols:                         # no-op for aligned shapes
        x2d = jnp.pad(x2d, ((0, pad_rows), (0, pad_cols)))

    # Weights/biases: constant block index -> DMAed once, VMEM-resident across
    # the whole grid; x / out tiles walk the batch and are double-buffered.
    def resident(shape):
        return pl.BlockSpec(shape, lambda i: (0, 0))

    out_full = pl.pallas_call(
        mlp_kernel,
        out_shape=jax.ShapeDtypeStruct((b_pad, out_pad), jnp.float32),
        grid=grid,
        in_specs=[
            pl.BlockSpec((tb, in_pad), lambda i: (i, 0)),    # x tile (f32)
            resident((in_pad, nf_pad)), resident((1, nf_pad)),
            resident((nf_pad, nf_pad)), resident((1, nf_pad)),
            resident((nf_pad, out_pad)), resident((1, out_pad)),
        ],
        out_specs=pl.BlockSpec((tb, out_pad), lambda i: (i, 0)),
        compiler_params=pltpu.CompilerParams(
            dimension_semantics=("parallel",)),              # both TCs on v7x
    )(x2d, w1p, b1p, w2p, b2p, w3p, b3p)

    return out_full[:B, :out_size]


def init_params(key, input_size, nf, out_size):
    """Deterministic synthetic init (uniform, like torch's default scale)."""
    ks = jax.random.split(key, 6)

    def lin(kw, kb, fan_in, fan_out):
        bound = 1.0 / jnp.sqrt(fan_in)
        w = jax.random.uniform(kw, (fan_in, fan_out), jnp.float32, -bound, bound)
        b = jax.random.uniform(kb, (1, fan_out), jnp.float32, -bound, bound)
        return w, b

    w1, b1 = lin(ks[0], ks[1], input_size, nf)
    w2, b2 = lin(ks[2], ks[3], nf, nf)
    w3, b3 = lin(ks[4], ks[5], nf, out_size)
    return (w1, b1, w2, b2, w3, b3)


if __name__ == "__main__":
    key = jax.random.PRNGKey(0)

    # config.task_in_dims = (4, 16, 16) -> input_size = 1024
    # config.task_out_dims = (10,)      -> out_size = 10
    B, C, H, W = 2, 4, 16, 16
    NF = 400
    OUT = 10
    INPUT_SIZE = C * H * W

    k_x, k_p = jax.random.split(key)
    x = jax.random.normal(k_x, (B, C, H, W), jnp.float32)
    params = init_params(k_p, INPUT_SIZE, NF, OUT)

    # one-time packing (pad + bf16 cast) outside the per-call path
    packed = jax.block_until_ready(pack_params(params))

    fwd = jax.jit(functools.partial(mlp_forward, out_size=OUT))
    out = jax.block_until_ready(fwd(x, packed))

    # reference: same bf16-operand / fp32-accumulate math in plain JAX
    w1, b1, w2, b2, w3, b3 = params
    xr = x.reshape(B, INPUT_SIZE).astype(jnp.bfloat16)
    h = jnp.maximum(
        jnp.dot(xr, w1.astype(jnp.bfloat16),
                preferred_element_type=jnp.float32) + b1, 0.0)
    h = jnp.maximum(
        jnp.dot(h.astype(jnp.bfloat16), w2.astype(jnp.bfloat16),
                preferred_element_type=jnp.float32) + b2, 0.0)
    ref = jnp.dot(h.astype(jnp.bfloat16), w3.astype(jnp.bfloat16),
                  preferred_element_type=jnp.float32) + b3

    assert out.shape == (B, OUT)
    assert jnp.allclose(out, ref, atol=2e-3, rtol=2e-3)

    print("KERNEL_OK")
</pallas_src>

<mosaic_0001>
module attributes {stable_mosaic.version = 11 : i64} {
  func.func @mlp_kernel(%arg0: i32, %arg1: memref<8x1024xf32, #tpu.memory_space<vmem>>, %arg2: memref<1024x512xbf16, #tpu.memory_space<vmem>>, %arg3: memref<1x512xf32, #tpu.memory_space<vmem>>, %arg4: memref<512x512xbf16, #tpu.memory_space<vmem>>, %arg5: memref<1x512xf32, #tpu.memory_space<vmem>>, %arg6: memref<512x128xbf16, #tpu.memory_space<vmem>>, %arg7: memref<1x128xf32, #tpu.memory_space<vmem>>, %arg8: memref<8x128xf32, #tpu.memory_space<vmem>>) attributes {dimension_semantics = [#tpu.dimension_semantics<parallel>], iteration_bounds = array<i64: 1>, scalar_prefetch = 0 : i64, scratch_operands = 0 : i64, tpu.core_type = #tpu.core_type<tc>, window_params = [{transform_indices = @transform_0, window_bounds = array<i64: 8, 1024>}, {pipeline_mode = #tpu.pipeline_mode<synchronous>, transform_indices = @transform_1, window_bounds = array<i64: 1024, 512>}, {pipeline_mode = #tpu.pipeline_mode<synchronous>, transform_indices = @transform_2, window_bounds = array<i64: 1, 512>}, {pipeline_mode = #tpu.pipeline_mode<synchronous>, transform_indices = @transform_3, window_bounds = array<i64: 512, 512>}, {pipeline_mode = #tpu.pipeline_mode<synchronous>, transform_indices = @transform_4, window_bounds = array<i64: 1, 512>}, {pipeline_mode = #tpu.pipeline_mode<synchronous>, transform_indices = @transform_5, window_bounds = array<i64: 512, 128>}, {pipeline_mode = #tpu.pipeline_mode<synchronous>, transform_indices = @transform_6, window_bounds = array<i64: 1, 128>}, {transform_indices = @transform_7, window_bounds = array<i64: 8, 128>}]} {
    %c0 = arith.constant 0 : index
    %c0_0 = arith.constant 0 : index
    %0 = vector.load %arg1[%c0, %c0_0] : memref<8x1024xf32, #tpu.memory_space<vmem>>, vector<8x1024xf32>
    %1 = arith.truncf %0 : vector<8x1024xf32> to vector<8x1024xbf16>
    %c0_1 = arith.constant 0 : index
    %c0_2 = arith.constant 0 : index
    %2 = vector.load %arg2[%c0_1, %c0_2] : memref<1024x512xbf16, #tpu.memory_space<vmem>>, vector<1024x512xbf16>
    %cst = arith.constant dense<0.000000e+00> : vector<8x512xf32>
    %3 = tpu.matmul %1, %2, %cst {dimension_numbers = #tpu.dot_dimension_numbers<[1], [0], [0], [1], [0, 0, 1, 1], [], []>} : vector<8x1024xbf16>, vector<1024x512xbf16>, vector<8x512xf32> -> vector<8x512xf32>
    %c0_3 = arith.constant 0 : index
    %c0_4 = arith.constant 0 : index
    %4 = vector.load %arg3[%c0_3, %c0_4] : memref<1x512xf32, #tpu.memory_space<vmem>>, vector<1x512xf32>
    %5 = vector.broadcast %4 : vector<1x512xf32> to vector<8x512xf32>
    %6 = arith.addf %3, %5 : vector<8x512xf32>
    %cst_5 = arith.constant 0.000000e+00 : f32
    %7 = vector.broadcast %cst_5 : f32 to vector<8x512xf32>
    %8 = arith.maximumf %6, %7 : vector<8x512xf32>
    %9 = arith.truncf %8 : vector<8x512xf32> to vector<8x512xbf16>
    %c0_6 = arith.constant 0 : index
    %c0_7 = arith.constant 0 : index
    %10 = vector.load %arg4[%c0_6, %c0_7] : memref<512x512xbf16, #tpu.memory_space<vmem>>, vector<512x512xbf16>
    %cst_8 = arith.constant dense<0.000000e+00> : vector<8x512xf32>
    %11 = tpu.matmul %9, %10, %cst_8 {dimension_numbers = #tpu.dot_dimension_numbers<[1], [0], [0], [1], [0, 0, 1, 1], [], []>} : vector<8x512xbf16>, vector<512x512xbf16>, vector<8x512xf32> -> vector<8x512xf32>
    %c0_9 = arith.constant 0 : index
    %c0_10 = arith.constant 0 : index
    %12 = vector.load %arg5[%c0_9, %c0_10] : memref<1x512xf32, #tpu.memory_space<vmem>>, vector<1x512xf32>
    %13 = vector.broadcast %12 : vector<1x512xf32> to vector<8x512xf32>
    %14 = arith.addf %11, %13 : vector<8x512xf32>
    %cst_11 = arith.constant 0.000000e+00 : f32
    %15 = vector.broadcast %cst_11 : f32 to vector<8x512xf32>
    %16 = arith.maximumf %14, %15 : vector<8x512xf32>
    %17 = arith.truncf %16 : vector<8x512xf32> to vector<8x512xbf16>
    %c0_12 = arith.constant 0 : index
    %c0_13 = arith.constant 0 : index
    %18 = vector.load %arg6[%c0_12, %c0_13] : memref<512x128xbf16, #tpu.memory_space<vmem>>, vector<512x128xbf16>
    %cst_14 = arith.constant dense<0.000000e+00> : vector<8x128xf32>
    %19 = tpu.matmul %17, %18, %cst_14 {dimension_numbers = #tpu.dot_dimension_numbers<[1], [0], [0], [1], [0, 0, 1, 1], [], []>} : vector<8x512xbf16>, vector<512x128xbf16>, vector<8x128xf32> -> vector<8x128xf32>
    %c0_15 = arith.constant 0 : index
    %c0_16 = arith.constant 0 : index
    %20 = vector.load %arg7[%c0_15, %c0_16] : memref<1x128xf32, #tpu.memory_space<vmem>>, vector<1x128xf32>
    %21 = vector.broadcast %20 : vector<1x128xf32> to vector<8x128xf32>
    %22 = arith.addf %19, %21 : vector<8x128xf32>
    %c0_17 = arith.constant 0 : index
    %c0_18 = arith.constant 0 : index
    %23 = vector.load %arg8[%c0_17, %c0_18] : memref<8x128xf32, #tpu.memory_space<vmem>>, vector<8x128xf32>
    tpu.vector_store %arg8[%c0_17, %c0_18], %22 {strides = array<i32>} : memref<8x128xf32, #tpu.memory_space<vmem>>, vector<8x128xf32>,
    return
  }
  func.func @transform_0(%arg0: i32) -> (i32, i32) {
    %c0_i32 = arith.constant 0 : i32
    %c0_i32_0 = arith.constant 0 : i32
    return %arg0, %c0_i32 : i32, i32
  }
  func.func @transform_1(%arg0: i32) -> (i32, i32) {
    %c0_i32 = arith.constant 0 : i32
    %c0_i32_0 = arith.constant 0 : i32
    %c0_i32_1 = arith.constant 0 : i32
    return %c0_i32, %c0_i32_0 : i32, i32
  }
  func.func @transform_2(%arg0: i32) -> (i32, i32) {
    %c0_i32 = arith.constant 0 : i32
    %c0_i32_0 = arith.constant 0 : i32
    %c0_i32_1 = arith.constant 0 : i32
    return %c0_i32, %c0_i32_0 : i32, i32
  }
  func.func @transform_3(%arg0: i32) -> (i32, i32) {
    %c0_i32 = arith.constant 0 : i32
    %c0_i32_0 = arith.constant 0 : i32
    %c0_i32_1 = arith.constant 0 : i32
    return %c0_i32, %c0_i32_0 : i32, i32
  }
  func.func @transform_4(%arg0: i32) -> (i32, i32) {
    %c0_i32 = arith.constant 0 : i32
    %c0_i32_0 = arith.constant 0 : i32
    %c0_i32_1 = arith.constant 0 : i32
    return %c0_i32, %c0_i32_0 : i32, i32
  }
  func.func @transform_5(%arg0: i32) -> (i32, i32) {
    %c0_i32 = arith.constant 0 : i32
    %c0_i32_0 = arith.constant 0 : i32
    %c0_i32_1 = arith.constant 0 : i32
    return %c0_i32, %c0_i32_0 : i32, i32
  }
  func.func @transform_6(%arg0: i32) -> (i32, i32) {
    %c0_i32 = arith.constant 0 : i32
    %c0_i32_0 = arith.constant 0 : i32
    %c0_i32_1 = arith.constant 0 : i32
    return %c0_i32, %c0_i32_0 : i32, i32
  }
  func.func @transform_7(%arg0: i32) -> (i32, i32) {
    %c0_i32 = arith.constant 0 : i32
    %c0_i32_0 = arith.constant 0 : i32
    return %arg0, %c0_i32 : i32, i32
  }
}

</mosaic_0001>

<bundles_post_ra>
// kernel: mlp_forward.1
= control target key start
LH: loop header
LB: loop body
LE: loop exit
PB: predicated region body
PF: predicated region fallthrough
CT: control target
= control target key end

     0   :  { %12 = vsyncpa [#allocation3], 0  ;;  %s4602_s0 = inlined_call_operand.vmem [shape: f32[8,1024], index: 0, kind: input, shape index: {}]   ;;  %s4603_s1 = inlined_call_operand.hbm [shape: bf16[1024,512], index: 1, kind: input, shape index: {}]   ;;  %s4604_s2 = inlined_call_operand.vmem [shape: f32[1,512], index: 2, kind: input, shape index: {}]   ;;  %s4605_s3 = inlined_call_operand.hbm [shape: bf16[512,512], index: 3, kind: input, shape index: {}]   ;;  %s4606_s4 = inlined_call_operand.vmem [shape: f32[1,512], index: 4, kind: input, shape index: {}]   ;;  %s4607_s5 = inlined_call_operand.hbm [shape: bf16[512,128], index: 5, kind: input, shape index: {}]   ;;  %s4608_s6 = inlined_call_operand.vmem [shape: f32[1,128], index: 6, kind: input, shape index: {}]   ;;  %s4609_s7 = inlined_call_operand.vmem [shape: f32[8,128], index: 7, kind: output, shape index: {}]  }
   0x1   :  { %13 = vsyncpa [#allocation5], 0  ;;  %s4430_s24 = smov [#allocation4]   ;;  %s4431_s26 = smov [#allocation2]  }
   0x2   :  { %s35_s25 = sshll.u32 %s4430_s24, 4  ;;  %s21_s27 = sshll.u32 %s4431_s26, 4  ;;  %s36_s25 = int_to_ptr.vmem [resolvable:$true] %s35_s25  ;;  %s22_s27 = int_to_ptr.vmem [resolvable:$true] %s21_s27 }
   0x3   :  { %s4374_s28 = scalar_lea.vmem %s36_s25, 16384  ;;  %p4379_p1 = scmp.lt.s32.totalorder %s36_s25, %s36_s25 }
   0x4   :  { %p4375_p0 = scmp.ne.s32.totalorder %s36_s25, %s4374_s28  ;;  %p4380_p2 = scmp.lt.s32.totalorder %s4374_s28, %s4374_s28 }
   0x6   :  { %p4381_p3 = por %p4380_p2, %p4379_p1 }
   0x8   :  { %p4382_p4 = pnand %p4381_p3, %p4375_p0 }
   0xa   :  { %4385 = shalt.err (!%p4382_p4)
}
   0xb   :  { %s4432_s29 = smov 256   ;;  %s4433_s30 = smov 16  }
   0xc   :  { %41 = dma.hbm_to_vmem [thread:$0]  %s4605_s3, 16384, %s36_s25, [#allocation5], %s4432_s29, %s4432_s29, %s4433_s30  }
   0xd   :  { %s4394_s10 = scalar_lea.vmem %s22_s27, 32768  ;;  %p4399_p6 = scmp.lt.s32.totalorder %s22_s27, %s22_s27 }
   0xe   :  { %p4395_p5 = scmp.ne.s32.totalorder %s22_s27, %s4394_s10  ;;  %p4400_p7 = scmp.lt.s32.totalorder %s4394_s10, %s4394_s10 }
  0x10   :  { %p4401_p8 = por %p4400_p7, %p4399_p6 }
  0x12   :  { %p4402_p9 = pnand %p4401_p8, %p4395_p5 }
  0x14   :  { %4405 = shalt.err (!%p4402_p9)
}
  0x15   :  { %27 = dma.hbm_to_vmem [thread:$0]  %s4603_s1, 32768, %s22_s27, [#allocation3], %s4432_s29, %s4432_s29, %s4433_s30  }
  0x16   :  { %s4434_s13 = smov [#allocation6]  }
  0x17   :  { %s49_s14 = sshll.u32 %s4434_s13, 4  ;;  %s50_s14 = int_to_ptr.vmem [resolvable:$true] %s49_s14 }
  0x18   :  { %s4414_s15 = scalar_lea.vmem %s50_s14, 4096  ;;  %p4419_p11 = scmp.lt.s32.totalorder %s50_s14, %s50_s14 }
  0x19   :  { %p4415_p10 = scmp.ne.s32.totalorder %s50_s14, %s4414_s15  ;;  %p4420_p12 = scmp.lt.s32.totalorder %s4414_s15, %s4414_s15 }
  0x1b   :  { %p4421_p13 = por %p4420_p12, %p4419_p11 }
  0x1d   :  { %p4422_p0 = pnand %p4421_p13, %p4415_p10 }
  0x1f   :  { %4425 = shalt.err (!%p4422_p0)
}
  0x20   :  { %s4435_s3 = smov 64   ;;  %s4436_s16 = smov 4  }
  0x21   :  { %55 = dma.hbm_to_vmem [thread:$0]  %s4607_s5, 4096, %s50_s14, [#allocation5], %s4435_s3, %s4435_s3, %s4436_s16  }
  0x22   :  { %4426 = dma.done.wait [#allocation3], 32768  }
  0x23   :  { %4427 = vsyncadd [#allocation3], 4294934528 }
  0x24   :  { %4428 = dma.done.wait [#allocation5], 20480  }
  0x25   :  { %4429 = vsyncadd [#allocation5], 4294946816  ;;  %v3758_v0 = vld [vmem:[#allocation2 + $0xe4] ss:$16 sps:$4 sm:$0xff]   ;;  %v3762_v2 = vld [vmem:[#allocation2 + $0xe0] ss:$16 sps:$4 sm:$0xff]  }
  0x26   :  { %v3760_v1 = vld [vmem:[#allocation2 + $0x2e4] ss:$16 sps:$4 sm:$0xff]   ;;  %1642 = vmatprep.subr.bf16.mxu0 %v3758_v0  ;;  %v3763_v3 = vld [vmem:[#allocation2 + $0x2e0] ss:$16 sps:$4 sm:$0xff]   ;;  %v69_v46 = vld [vmem:[%s4602_s0 + $0x8] sm:$0xff] }
  0x27   :  { %1683 = vmatprep.subr.bf16.mxu1 %v3760_v1  ;;  %v3764_v4 = vld [vmem:[#allocation2 + $0xc4] ss:$16 sps:$4 sm:$0xff]   ;;  %1643 = vmatpush1.bf16.msra.mxu0 %v3762_v2  ;;  %v3768_v6 = vld [vmem:[#allocation2 + $0xc0] ss:$16 sps:$4 sm:$0xff]   ;;  %v4489_v49 = vpack.c.bf16 %v69_v46, %v69_v46  ;;  %v71_v50 = vld [vmem:[%s4602_s0 + $0x18] sm:$0xff] }
  0x28   :  { %1684 = vmatpush1.bf16.msra.mxu1 %v3763_v3  ;;  %v3766_v5 = vld [vmem:[#allocation2 + $0x2c4] ss:$16 sps:$4 sm:$0xff]   ;;  %1644 = vmatprep.subr.bf16.mxu0 %v3764_v4  ;;  %v3769_v7 = vld [vmem:[#allocation2 + $0x2c0] ss:$16 sps:$4 sm:$0xff]   ;;  %v4494_v52 = vpack.c.bf16 %v71_v50, %v71_v50 }
  0x29   :  { %1685 = vmatprep.subr.bf16.mxu1 %v3766_v5  ;;  %v3770_v8 = vld [vmem:[#allocation2 + $0xa4] ss:$16 sps:$4 sm:$0xff]   ;;  %v3774_v10 = vld [vmem:[#allocation2 + $0xa0] ss:$16 sps:$4 sm:$0xff]   ;;  %1674 = vmatprep.mubr.bf16.mxu0 %v4489_v49 }
  0x2a   :  { %v3772_v9 = vld [vmem:[#allocation2 + $0x2a4] ss:$16 sps:$4 sm:$0xff]   ;;  %v3775_v11 = vld [vmem:[#allocation2 + $0x2a0] ss:$16 sps:$4 sm:$0xff]   ;;  %1715 = vmatprep.mubr.bf16.mxu1 %v4494_v52 }
  0x2b   :  { %1645 = vmatpush1.bf16.msra.mxu0 %v3768_v6  ;;  %v3776_v12 = vld [vmem:[#allocation2 + $0x84] ss:$16 sps:$4 sm:$0xff]   ;;  %v3780_v14 = vld [vmem:[#allocation2 + $0x80] ss:$16 sps:$4 sm:$0xff]  }
  0x2c   :  { %1686 = vmatpush1.bf16.msra.mxu1 %v3769_v7  ;;  %1646 = vmatprep.subr.bf16.mxu0 %v3770_v8  ;;  %v3778_v13 = vld [vmem:[#allocation2 + $0x284] ss:$16 sps:$4 sm:$0xff]   ;;  %v3781_v15 = vld [vmem:[#allocation2 + $0x280] ss:$16 sps:$4 sm:$0xff]  }
  0x2d   :  { %1687 = vmatprep.subr.bf16.mxu1 %v3772_v9  ;;  %v3782_v16 = vld [vmem:[#allocation2 + $0x64] ss:$16 sps:$4 sm:$0xff]   ;;  %v3786_v18 = vld [vmem:[#allocation2 + $0x60] ss:$16 sps:$4 sm:$0xff]  }
  0x2e   :  { %v3784_v17 = vld [vmem:[#allocation2 + $0x264] ss:$16 sps:$4 sm:$0xff]   ;;  %v3787_v19 = vld [vmem:[#allocation2 + $0x260] ss:$16 sps:$4 sm:$0xff]  }
  0x2f   :  { %1647 = vmatpush1.bf16.msra.mxu0 %v3774_v10  ;;  %v3788_v20 = vld [vmem:[#allocation2 + $0x44] ss:$16 sps:$4 sm:$0xff]   ;;  %v3792_v22 = vld [vmem:[#allocation2 + $0x40] ss:$16 sps:$4 sm:$0xff]  }
  0x30   :  { %1688 = vmatpush1.bf16.msra.mxu1 %v3775_v11  ;;  %1648 = vmatprep.subr.bf16.mxu0 %v3776_v12  ;;  %v3790_v21 = vld [vmem:[#allocation2 + $0x244] ss:$16 sps:$4 sm:$0xff]   ;;  %v3793_v23 = vld [vmem:[#allocation2 + $0x240] ss:$16 sps:$4 sm:$0xff]  }
  0x31   :  { %1689 = vmatprep.subr.bf16.mxu1 %v3778_v13  ;;  %v3794_v24 = vld [vmem:[#allocation2 + $0x24] ss:$16 sps:$4 sm:$0xff]   ;;  %v3798_v26 = vld [vmem:[#allocation2 + $0x20] ss:$16 sps:$4 sm:$0xff]  }
  0x32   :  { %v3796_v25 = vld [vmem:[#allocation2 + $0x224] ss:$16 sps:$4 sm:$0xff]   ;;  %v3799_v27 = vld [vmem:[#allocation2 + $0x220] ss:$16 sps:$4 sm:$0xff]  }
  0x33   :  { %1649 = vmatpush1.bf16.msra.mxu0 %v3780_v14  ;;  %v3800_v28 = vld [vmem:[#allocation2 + $0x4] ss:$16 sps:$4 sm:$0xff]   ;;  %v3804_v30 = vld [vmem:[#allocation2] ss:$16 sps:$4 sm:$0xff]  }
  0x34   :  { %1690 = vmatpush1.bf16.msra.mxu1 %v3781_v15  ;;  %1650 = vmatprep.subr.bf16.mxu0 %v3782_v16  ;;  %v3802_v29 = vld [vmem:[#allocation2 + $0x204] ss:$16 sps:$4 sm:$0xff]   ;;  %v3805_v31 = vld [vmem:[#allocation2 + $0x200] ss:$16 sps:$4 sm:$0xff]  }
  0x35   :  { %1691 = vmatprep.subr.bf16.mxu1 %v3784_v17  ;;  %v3806_v32 = vld [vmem:[#allocation2 + $0x1e4] ss:$16 sps:$4 sm:$0xff]   ;;  %v3810_v34 = vld [vmem:[#allocation2 + $0x1e0] ss:$16 sps:$4 sm:$0xff]  }
  0x36   :  { %v3808_v33 = vld [vmem:[#allocation2 + $0x3e4] ss:$16 sps:$4 sm:$0xff]   ;;  %v3811_v35 = vld [vmem:[#allocation2 + $0x3e0] ss:$16 sps:$4 sm:$0xff]  }
  0x37   :  { %1651 = vmatpush1.bf16.msra.mxu0 %v3786_v18  ;;  %v3812_v36 = vld [vmem:[#allocation2 + $0x1c4] ss:$16 sps:$4 sm:$0xff]   ;;  %v3816_v38 = vld [vmem:[#allocation2 + $0x1c0] ss:$16 sps:$4 sm:$0xff]  }
  0x38   :  { %1692 = vmatpush1.bf16.msra.mxu1 %v3787_v19  ;;  %1652 = vmatprep.subr.bf16.mxu0 %v3788_v20  ;;  %v3814_v37 = vld [vmem:[#allocation2 + $0x3c4] ss:$16 sps:$4 sm:$0xff]   ;;  %v3817_v39 = vld [vmem:[#allocation2 + $0x3c0] ss:$16 sps:$4 sm:$0xff]  }
  0x39   :  { %1693 = vmatprep.subr.bf16.mxu1 %v3790_v21  ;;  %v3818_v40 = vld [vmem:[#allocation2 + $0x1a4] ss:$16 sps:$4 sm:$0xff]   ;;  %v3822_v42 = vld [vmem:[#allocation2 + $0x1a0] ss:$16 sps:$4 sm:$0xff]  }
  0x3a   :  { %v3820_v41 = vld [vmem:[#allocation2 + $0x3a4] ss:$16 sps:$4 sm:$0xff]   ;;  %v3823_v43 = vld [vmem:[#allocation2 + $0x3a0] ss:$16 sps:$4 sm:$0xff]  }
  0x3b   :  { %1653 = vmatpush1.bf16.msra.mxu0 %v3792_v22  ;;  %v3824_v44 = vld [vmem:[#allocation2 + $0x184] ss:$16 sps:$4 sm:$0xff]   ;;  %v3828_v47 = vld [vmem:[#allocation2 + $0x180] ss:$16 sps:$4 sm:$0xff]  }
  0x3c   :  { %1694 = vmatpush1.bf16.msra.mxu1 %v3793_v23  ;;  %1654 = vmatprep.subr.bf16.mxu0 %v3794_v24  ;;  %v3826_v45 = vld [vmem:[#allocation2 + $0x384] ss:$16 sps:$4 sm:$0xff]   ;;  %v3829_v48 = vld [vmem:[#allocation2 + $0x380] ss:$16 sps:$4 sm:$0xff]  }
  0x3d   :  { %1695 = vmatprep.subr.bf16.mxu1 %v3796_v25  ;;  %v3830_v51 = vld [vmem:[#allocation2 + $0x164] ss:$16 sps:$4 sm:$0xff]   ;;  %v3834_v54 = vld [vmem:[#allocation2 + $0x160] ss:$16 sps:$4 sm:$0xff]  }
  0x3e   :  { %v3832_v53 = vld [vmem:[#allocation2 + $0x364] ss:$16 sps:$4 sm:$0xff]   ;;  %v3835_v55 = vld [vmem:[#allocation2 + $0x360] ss:$16 sps:$4 sm:$0xff]  }
  0x3f   :  { %1655 = vmatpush1.bf16.msra.mxu0 %v3798_v26  ;;  %v3836_v56 = vld [vmem:[#allocation2 + $0x144] ss:$16 sps:$4 sm:$0xff]   ;;  %v3840_v58 = vld [vmem:[#allocation2 + $0x140] ss:$16 sps:$4 sm:$0xff]  }
  0x40   :  { %1696 = vmatpush1.bf16.msra.mxu1 %v3799_v27  ;;  %1656 = vmatprep.subr.bf16.mxu0 %v3800_v28  ;;  %v3838_v57 = vld [vmem:[#allocation2 + $0x344] ss:$16 sps:$4 sm:$0xff]   ;;  %v3841_v59 = vld [vmem:[#allocation2 + $0x340] ss:$16 sps:$4 sm:$0xff]  }
  0x41   :  { %1697 = vmatprep.subr.bf16.mxu1 %v3802_v29  ;;  %v3842_v60 = vld [vmem:[#allocation2 + $0x124] ss:$16 sps:$4 sm:$0xff]   ;;  %v3846_v62 = vld [vmem:[#allocation2 + $0x120] ss:$16 sps:$4 sm:$0xff]  }
  0x42   :  { %v3844_v61 = vld [vmem:[#allocation2 + $0x324] ss:$16 sps:$4 sm:$0xff]   ;;  %v3847_v63 = vld [vmem:[#allocation2 + $0x320] ss:$16 sps:$4 sm:$0xff]  }
  0x43   :  { %1657 = vmatpush1.bf16.msra.mxu0 %v3804_v30  ;;  %v3848_v0 = vld [vmem:[#allocation2 + $0x104] ss:$16 sps:$4 sm:$0xff]   ;;  %v3852_v2 = vld [vmem:[#allocation2 + $0x100] ss:$16 sps:$4 sm:$0xff]  }
  0x44   :  { %1698 = vmatpush1.bf16.msra.mxu1 %v3805_v31  ;;  %1658 = vmatprep.subr.bf16.mxu0 %v3806_v32  ;;  %v3850_v1 = vld [vmem:[#allocation2 + $0x304] ss:$16 sps:$4 sm:$0xff]   ;;  %v3853_v3 = vld [vmem:[#allocation2 + $0x300] ss:$16 sps:$4 sm:$0xff]  }
  0x45   :  { %1699 = vmatprep.subr.bf16.mxu1 %v3808_v33  ;;  %v68_v4 = vld [vmem:[%s4602_s0] sm:$0xff]  ;;  %v70_v5 = vld [vmem:[%s4602_s0 + $0x10] sm:$0xff] }
  0x46   :  { %v3856_v6 = vld [vmem:[#allocation2 + $0x4e4] ss:$16 sps:$4 sm:$0xff]   ;;  %v4504_v8 = vpack.c.bf16 %v68_v4, %v68_v4  ;;  %v4506_v9 = vpack.c.bf16 %v70_v5, %v70_v5  ;;  %v3854_v10 = vld [vmem:[#allocation2 + $0x4e0] ss:$16 sps:$4 sm:$0xff]  }
  0x47   :  { %1659 = vmatpush2.bf16.msra.mxu0 %v3810_v34  ;;  %v3859_v7 = vld [vmem:[#allocation2 + $0x6e4] ss:$16 sps:$4 sm:$0xff]   ;;  %v3857_v11 = vld [vmem:[#allocation2 + $0x6e0] ss:$16 sps:$4 sm:$0xff]   ;;  %v73_v34 = vld [vmem:[%s4602_s0 + $0x28] sm:$0xff] }
  0x48   :  { %1700 = vmatpush2.bf16.msra.mxu1 %v3811_v35  ;;  %1660 = vmatprep.subr.bf16.mxu0 %v3812_v36  ;;  %v3862_v12 = vld [vmem:[#allocation2 + $0x4c4] ss:$16 sps:$4 sm:$0xff]   ;;  %v3860_v14 = vld [vmem:[#allocation2 + $0x4c0] ss:$16 sps:$4 sm:$0xff]  }
  0x49   :  { %1701 = vmatprep.subr.bf16.mxu1 %v3814_v37  ;;  %v3865_v13 = vld [vmem:[#allocation2 + $0x6c4] ss:$16 sps:$4 sm:$0xff]   ;;  %v3863_v15 = vld [vmem:[#allocation2 + $0x6c0] ss:$16 sps:$4 sm:$0xff]   ;;  %v4513_v37 = vpack.c.bf16 %v73_v34, %v73_v34  ;;  %v3968_v34 = vld [vmem:[#allocation2 + $0x88] ss:$16 sps:$4 sm:$0xff]  }
  0x4a   :  { %v3868_v16 = vld [vmem:[#allocation2 + $0x4a4] ss:$16 sps:$4 sm:$0xff]   ;;  %v3866_v18 = vld [vmem:[#allocation2 + $0x4a0] ss:$16 sps:$4 sm:$0xff]  }
  0x4b   :  { %1661 = vmatpush2.bf16.msra.mxu0 %v3816_v38  ;;  %v3871_v17 = vld [vmem:[#allocation2 + $0x6a4] ss:$16 sps:$4 sm:$0xff]   ;;  %v3869_v19 = vld [vmem:[#allocation2 + $0x6a0] ss:$16 sps:$4 sm:$0xff]   ;;  %v75_v38 = vld [vmem:[%s4602_s0 + $0x38] sm:$0xff] }
  0x4c   :  { %1702 = vmatpush2.bf16.msra.mxu1 %v3817_v39  ;;  %1662 = vmatprep.subr.bf16.mxu0 %v3818_v40  ;;  %v3874_v20 = vld [vmem:[#allocation2 + $0x484] ss:$16 sps:$4 sm:$0xff]   ;;  %v3872_v22 = vld [vmem:[#allocation2 + $0x480] ss:$16 sps:$4 sm:$0xff]   ;;  %v4518_v40 = vpack.c.bf16 %v75_v38, %v75_v38  ;;  %v3979_v38 = vld [vmem:[#allocation2 + $0x26c] ss:$16 sps:$4 sm:$0xff]  }
  0x4d   :  { %1703 = vmatprep.subr.bf16.mxu1 %v3820_v41  ;;  %v3877_v21 = vld [vmem:[#allocation2 + $0x684] ss:$16 sps:$4 sm:$0xff]   ;;  %v3875_v23 = vld [vmem:[#allocation2 + $0x680] ss:$16 sps:$4 sm:$0xff]  }
  0x4e   :  { %v3880_v24 = vld [vmem:[#allocation2 + $0x464] ss:$16 sps:$4 sm:$0xff]   ;;  %v3878_v26 = vld [vmem:[#allocation2 + $0x460] ss:$16 sps:$4 sm:$0xff]  }
  0x4f   :  { %1663 = vmatpush2.bf16.msra.mxu0 %v3822_v42  ;;  %v3883_v25 = vld [vmem:[#allocation2 + $0x664] ss:$16 sps:$4 sm:$0xff]   ;;  %v3881_v27 = vld [vmem:[#allocation2 + $0x660] ss:$16 sps:$4 sm:$0xff]  }
  0x50   :  { %1704 = vmatpush2.bf16.msra.mxu1 %v3823_v43  ;;  %1664 = vmatprep.subr.bf16.mxu0 %v3824_v44  ;;  %v3886_v28 = vld [vmem:[#allocation2 + $0x444] ss:$16 sps:$4 sm:$0xff]   ;;  %v3884_v30 = vld [vmem:[#allocation2 + $0x440] ss:$16 sps:$4 sm:$0xff]  }
  0x51   :  { %1705 = vmatprep.subr.bf16.mxu1 %v3826_v45  ;;  %v3889_v29 = vld [vmem:[#allocation2 + $0x644] ss:$16 sps:$4 sm:$0xff]   ;;  %v3887_v31 = vld [vmem:[#allocation2 + $0x640] ss:$16 sps:$4 sm:$0xff]  }
  0x52   :  { %v3892_v32 = vld [vmem:[#allocation2 + $0x424] ss:$16 sps:$4 sm:$0xff]   ;;  %v3890_v35 = vld [vmem:[#allocation2 + $0x420] ss:$16 sps:$4 sm:$0xff]  }
  0x53   :  { %1665 = vmatpush2.bf16.msra.mxu0 %v3828_v47  ;;  %v3895_v33 = vld [vmem:[#allocation2 + $0x624] ss:$16 sps:$4 sm:$0xff]   ;;  %v3893_v36 = vld [vmem:[#allocation2 + $0x620] ss:$16 sps:$4 sm:$0xff]  }
  0x54   :  { %1706 = vmatpush2.bf16.msra.mxu1 %v3829_v48  ;;  %1666 = vmatprep.subr.bf16.mxu0 %v3830_v51  ;;  %v3898_v39 = vld [vmem:[#allocation2 + $0x404] ss:$16 sps:$4 sm:$0xff]   ;;  %v3896_v42 = vld [vmem:[#allocation2 + $0x400] ss:$16 sps:$4 sm:$0xff]  }
  0x55   :  { %1707 = vmatprep.subr.bf16.mxu1 %v3832_v53  ;;  %v3901_v41 = vld [vmem:[#allocation2 + $0x604] ss:$16 sps:$4 sm:$0xff]   ;;  %v3899_v43 = vld [vmem:[#allocation2 + $0x600] ss:$16 sps:$4 sm:$0xff]  }
  0x56   :  { %v3904_v44 = vld [vmem:[#allocation2 + $0x5e4] ss:$16 sps:$4 sm:$0xff]   ;;  %v3902_v46 = vld [vmem:[#allocation2 + $0x5e0] ss:$16 sps:$4 sm:$0xff]  }
  0x57   :  { %1667 = vmatpush2.bf16.msra.mxu0 %v3834_v54  ;;  %v3907_v45 = vld [vmem:[#allocation2 + $0x7e4] ss:$16 sps:$4 sm:$0xff]   ;;  %v3905_v47 = vld [vmem:[#allocation2 + $0x7e0] ss:$16 sps:$4 sm:$0xff]  }
  0x58   :  { %1708 = vmatpush2.bf16.msra.mxu1 %v3835_v55  ;;  %1668 = vmatprep.subr.bf16.mxu0 %v3836_v56  ;;  %v3910_v48 = vld [vmem:[#allocation2 + $0x5c4] ss:$16 sps:$4 sm:$0xff]   ;;  %v3908_v51 = vld [vmem:[#allocation2 + $0x5c0] ss:$16 sps:$4 sm:$0xff]  }
  0x59   :  { %1709 = vmatprep.subr.bf16.mxu1 %v3838_v57  ;;  %v3913_v50 = vld [vmem:[#allocation2 + $0x7c4] ss:$16 sps:$4 sm:$0xff]   ;;  %v3911_v53 = vld [vmem:[#allocation2 + $0x7c0] ss:$16 sps:$4 sm:$0xff]  }
  0x5a   :  { %v3916_v54 = vld [vmem:[#allocation2 + $0x5a4] ss:$16 sps:$4 sm:$0xff]   ;;  %v3914_v56 = vld [vmem:[#allocation2 + $0x5a0] ss:$16 sps:$4 sm:$0xff]  }
  0x5b   :  { %1669 = vmatpush2.bf16.msra.mxu0 %v3840_v58  ;;  %v3919_v55 = vld [vmem:[#allocation2 + $0x7a4] ss:$16 sps:$4 sm:$0xff]   ;;  %v3917_v57 = vld [vmem:[#allocation2 + $0x7a0] ss:$16 sps:$4 sm:$0xff]  }
  0x5c   :  { %1710 = vmatpush2.bf16.msra.mxu1 %v3841_v59  ;;  %1670 = vmatprep.subr.bf16.mxu0 %v3842_v60  ;;  %v3922_v58 = vld [vmem:[#allocation2 + $0x584] ss:$16 sps:$4 sm:$0xff]   ;;  %v3920_v60 = vld [vmem:[#allocation2 + $0x580] ss:$16 sps:$4 sm:$0xff]  }
  0x5d   :  { %1711 = vmatprep.subr.bf16.mxu1 %v3844_v61  ;;  %v3925_v59 = vld [vmem:[#allocation2 + $0x784] ss:$16 sps:$4 sm:$0xff]   ;;  %v3923_v61 = vld [vmem:[#allocation2 + $0x780] ss:$16 sps:$4 sm:$0xff]  }
  0x5e   :  { %v3932_v4 = vld [vmem:[#allocation2 + $0x540] ss:$16 sps:$4 sm:$0xff]  }
  0x5f   :  { %1671 = vmatpush2.bf16.msra.mxu0 %v3846_v62  ;;  %v3928_v62 = vld [vmem:[#allocation2 + $0x564] ss:$16 sps:$4 sm:$0xff]   ;;  %v3935_v5 = vld [vmem:[#allocation2 + $0x740] ss:$16 sps:$4 sm:$0xff]  }
  0x60   :  { %1712 = vmatpush2.bf16.msra.mxu1 %v3847_v63  ;;  %1672 = vmatprep.subr.bf16.mxu0 %v3848_v0  ;;  %v3931_v63 = vld [vmem:[#allocation2 + $0x764] ss:$16 sps:$4 sm:$0xff]   ;;  %v3926_v0 = vld [vmem:[#allocation2 + $0x560] ss:$16 sps:$4 sm:$0xff]  }
  0x61   :  { %1713 = vmatprep.subr.bf16.mxu1 %v3850_v1  ;;  %v3929_v1 = vld [vmem:[#allocation2 + $0x760] ss:$16 sps:$4 sm:$0xff]  }
  0x63   :  { %1673 = vmatpush2.bf16.msra.mxu0 %v3852_v2  ;;  %v3934_v2 = vld [vmem:[#allocation2 + $0x544] ss:$16 sps:$4 sm:$0xff]  }
  0x64   :  { %1714 = vmatpush2.bf16.msra.mxu1 %v3853_v3  ;;  %1724 = vmatprep.subr.bf16.mxu0 %v3856_v6  ;;  %v3937_v3 = vld [vmem:[#allocation2 + $0x744] ss:$16 sps:$4 sm:$0xff]  }
  0x65   :  { %1765 = vmatprep.subr.bf16.mxu1 %v3859_v7  ;;  %v3940_v6 = vld [vmem:[#allocation2 + $0x524] ss:$16 sps:$4 sm:$0xff]  }
  0x66   :  { %1675 = vmatmul.mubr.bf16.vlgmr.msra.gmra.mxu0 %v4504_v8  ;;  %v3943_v7 = vld [vmem:[#allocation2 + $0x724] ss:$16 sps:$4 sm:$0xff]  }
  0x67   :  { %1716 = vmatmul.mubr.bf16.vlgmr.msra.gmra.mxu1 %v4506_v9  ;;  %1725 = vmatpush1.bf16.msra.mxu0 %v3854_v10  ;;  %v3938_v10 = vld [vmem:[#allocation2 + $0x520] ss:$16 sps:$4 sm:$0xff]  }
  0x68   :  { %1766 = vmatpush1.bf16.msra.mxu1 %v3857_v11  ;;  %1726 = vmatprep.subr.bf16.mxu0 %v3862_v12  ;;  %v3941_v11 = vld [vmem:[#allocation2 + $0x720] ss:$16 sps:$4 sm:$0xff]   ;;  %v3946_v12 = vld [vmem:[#allocation2 + $0x504] ss:$16 sps:$4 sm:$0xff]  }
  0x69   :  { %1767 = vmatprep.subr.bf16.mxu1 %v3865_v13  ;;  %1756 = vmatprep.mubr.bf16.mxu0 %v4513_v37  ;;  %v3949_v13 = vld [vmem:[#allocation2 + $0x704] ss:$16 sps:$4 sm:$0xff]  }
  0x6a   :  { %1797 = vmatprep.mubr.bf16.mxu1 %v4518_v40 }
  0x6b   :  { %1727 = vmatpush1.bf16.msra.mxu0 %v3860_v14  ;;  %v3944_v14 = vld [vmem:[#allocation2 + $0x500] ss:$16 sps:$4 sm:$0xff]  }
  0x6c   :  { %1768 = vmatpush1.bf16.msra.mxu1 %v3863_v15  ;;  %1728 = vmatprep.subr.bf16.mxu0 %v3868_v16  ;;  %v3947_v15 = vld [vmem:[#allocation2 + $0x700] ss:$16 sps:$4 sm:$0xff]  }
  0x6d   :  { %1769 = vmatprep.subr.bf16.mxu1 %v3871_v17  ;;  %v72_v16 = vld [vmem:[%s4602_s0 + $0x20] sm:$0xff]  ;;  %v74_v17 = vld [vmem:[%s4602_s0 + $0x30] sm:$0xff] }
  0x6f   :  { %1729 = vmatpush1.bf16.msra.mxu0 %v3866_v18  ;;  %v3952_v18 = vld [vmem:[#allocation2 + $0xec] ss:$16 sps:$4 sm:$0xff]  }
  0x70   :  { %1770 = vmatpush1.bf16.msra.mxu1 %v3869_v19  ;;  %1730 = vmatprep.subr.bf16.mxu0 %v3874_v20  ;;  %v3955_v19 = vld [vmem:[#allocation2 + $0x2ec] ss:$16 sps:$4 sm:$0xff]   ;;  %v4528_v20 = vpack.c.bf16 %v72_v16, %v72_v16 }
  0x71   :  { %1771 = vmatprep.subr.bf16.mxu1 %v3877_v21  ;;  %v4530_v21 = vpack.c.bf16 %v74_v17, %v74_v17  ;;  %v4036_v16 = vld [vmem:[#allocation2 + $0x12c] ss:$16 sps:$4 sm:$0xff]  }
  0x72   :  { %v4039_v17 = vld [vmem:[#allocation2 + $0x32c] ss:$16 sps:$4 sm:$0xff]  }
  0x73   :  { %1731 = vmatpush1.bf16.msra.mxu0 %v3872_v22  ;;  %v3950_v22 = vld [vmem:[#allocation2 + $0xe8] ss:$16 sps:$4 sm:$0xff]  }
  0x74   :  { %1772 = vmatpush1.bf16.msra.mxu1 %v3875_v23  ;;  %1732 = vmatprep.subr.bf16.mxu0 %v3880_v24  ;;  %v3953_v23 = vld [vmem:[#allocation2 + $0x2e8] ss:$16 sps:$4 sm:$0xff]   ;;  %v3958_v24 = vld [vmem:[#allocation2 + $0xcc] ss:$16 sps:$4 sm:$0xff]  }
  0x75   :  { %1773 = vmatprep.subr.bf16.mxu1 %v3883_v25  ;;  %v3961_v25 = vld [vmem:[#allocation2 + $0x2cc] ss:$16 sps:$4 sm:$0xff]  }
  0x77   :  { %1733 = vmatpush1.bf16.msra.mxu0 %v3878_v26  ;;  %v3956_v26 = vld [vmem:[#allocation2 + $0xc8] ss:$16 sps:$4 sm:$0xff]  }
  0x78   :  { %1774 = vmatpush1.bf16.msra.mxu1 %v3881_v27  ;;  %1734 = vmatprep.subr.bf16.mxu0 %v3886_v28  ;;  %v3959_v27 = vld [vmem:[#allocation2 + $0x2c8] ss:$16 sps:$4 sm:$0xff]   ;;  %v3964_v28 = vld [vmem:[#allocation2 + $0xac] ss:$16 sps:$4 sm:$0xff]  }
  0x79   :  { %1775 = vmatprep.subr.bf16.mxu1 %v3889_v29  ;;  %v3967_v29 = vld [vmem:[#allocation2 + $0x2ac] ss:$16 sps:$4 sm:$0xff]  }
  0x7b   :  { %1735 = vmatpush1.bf16.msra.mxu0 %v3884_v30  ;;  %v3962_v30 = vld [vmem:[#allocation2 + $0xa8] ss:$16 sps:$4 sm:$0xff]  }
  0x7c   :  { %1776 = vmatpush1.bf16.msra.mxu1 %v3887_v31  ;;  %1736 = vmatprep.subr.bf16.mxu0 %v3892_v32  ;;  %v3965_v31 = vld [vmem:[#allocation2 + $0x2a8] ss:$16 sps:$4 sm:$0xff]   ;;  %v3970_v32 = vld [vmem:[#allocation2 + $0x8c] ss:$16 sps:$4 sm:$0xff]  }
  0x7d   :  { %1777 = vmatprep.subr.bf16.mxu1 %v3895_v33  ;;  %v3973_v33 = vld [vmem:[#allocation2 + $0x28c] ss:$16 sps:$4 sm:$0xff]  }
  0x7f   :  { %1737 = vmatpush1.bf16.msra.mxu0 %v3890_v35  ;;  %v3971_v35 = vld [vmem:[#allocation2 + $0x288] ss:$16 sps:$4 sm:$0xff]  }
  0x80   :  { %1778 = vmatpush1.bf16.msra.mxu1 %v3893_v36  ;;  %1738 = vmatprep.subr.bf16.mxu0 %v3898_v39  ;;  %v3976_v36 = vld [vmem:[#allocation2 + $0x6c] ss:$16 sps:$4 sm:$0xff]   ;;  %v3974_v39 = vld [vmem:[#allocation2 + $0x68] ss:$16 sps:$4 sm:$0xff]  }
  0x81   :  { %1779 = vmatprep.subr.bf16.mxu1 %v3901_v41  ;;  %v3985_v41 = vld [vmem:[#allocation2 + $0x24c] ss:$16 sps:$4 sm:$0xff]  }
  0x83   :  { %1739 = vmatpush1.bf16.msra.mxu0 %v3896_v42  ;;  %v3980_v42 = vld [vmem:[#allocation2 + $0x48] ss:$16 sps:$4 sm:$0xff]  }
  0x84   :  { %1780 = vmatpush1.bf16.msra.mxu1 %v3899_v43  ;;  %1740 = vmatprep.subr.bf16.mxu0 %v3904_v44  ;;  %v3983_v43 = vld [vmem:[#allocation2 + $0x248] ss:$16 sps:$4 sm:$0xff]   ;;  %v3988_v44 = vld [vmem:[#allocation2 + $0x2c] ss:$16 sps:$4 sm:$0xff]  }
  0x85   :  { %1781 = vmatprep.subr.bf16.mxu1 %v3907_v45  ;;  %v3991_v45 = vld [vmem:[#allocation2 + $0x22c] ss:$16 sps:$4 sm:$0xff]  }
  0x87   :  { %1741 = vmatpush2.bf16.msra.mxu0 %v3902_v46  ;;  %v3986_v46 = vld [vmem:[#allocation2 + $0x28] ss:$16 sps:$4 sm:$0xff]  }
  0x88   :  { %1782 = vmatpush2.bf16.msra.mxu1 %v3905_v47  ;;  %1742 = vmatprep.subr.bf16.mxu0 %v3910_v48  ;;  %v3989_v47 = vld [vmem:[#allocation2 + $0x228] ss:$16 sps:$4 sm:$0xff]   ;;  %v3994_v48 = vld [vmem:[#allocation2 + $0xc] ss:$16 sps:$4 sm:$0xff]  }
  0x89   :  { %1783 = vmatprep.subr.bf16.mxu1 %v3913_v50  ;;  %v3997_v50 = vld [vmem:[#allocation2 + $0x20c] ss:$16 sps:$4 sm:$0xff]  }
  0x8b   :  { %1743 = vmatpush2.bf16.msra.mxu0 %v3908_v51  ;;  %v3992_v51 = vld [vmem:[#allocation2 + $0x8] ss:$16 sps:$4 sm:$0xff]  }
  0x8c   :  { %1784 = vmatpush2.bf16.msra.mxu1 %v3911_v53  ;;  %1744 = vmatprep.subr.bf16.mxu0 %v3916_v54  ;;  %v3995_v53 = vld [vmem:[#allocation2 + $0x208] ss:$16 sps:$4 sm:$0xff]   ;;  %v4000_v54 = vld [vmem:[#allocation2 + $0x1ec] ss:$16 sps:$4 sm:$0xff]  }
  0x8d   :  { %1785 = vmatprep.subr.bf16.mxu1 %v3919_v55  ;;  %v4003_v55 = vld [vmem:[#allocation2 + $0x3ec] ss:$16 sps:$4 sm:$0xff]  }
  0x8f   :  { %1745 = vmatpush2.bf16.msra.mxu0 %v3914_v56  ;;  %v3998_v56 = vld [vmem:[#allocation2 + $0x1e8] ss:$16 sps:$4 sm:$0xff]  }
  0x90   :  { %1786 = vmatpush2.bf16.msra.mxu1 %v3917_v57  ;;  %1746 = vmatprep.subr.bf16.mxu0 %v3922_v58  ;;  %v4001_v57 = vld [vmem:[#allocation2 + $0x3e8] ss:$16 sps:$4 sm:$0xff]   ;;  %v4006_v58 = vld [vmem:[#allocation2 + $0x1cc] ss:$16 sps:$4 sm:$0xff]  }
  0x91   :  { %1787 = vmatprep.subr.bf16.mxu1 %v3925_v59  ;;  %v4009_v59 = vld [vmem:[#allocation2 + $0x3cc] ss:$16 sps:$4 sm:$0xff]  }
  0x93   :  { %1747 = vmatpush2.bf16.msra.mxu0 %v3920_v60  ;;  %v4004_v60 = vld [vmem:[#allocation2 + $0x1c8] ss:$16 sps:$4 sm:$0xff]  }
  0x94   :  { %1788 = vmatpush2.bf16.msra.mxu1 %v3923_v61  ;;  %1748 = vmatprep.subr.bf16.mxu0 %v3928_v62  ;;  %v4007_v61 = vld [vmem:[#allocation2 + $0x3c8] ss:$16 sps:$4 sm:$0xff]   ;;  %v4012_v62 = vld [vmem:[#allocation2 + $0x1ac] ss:$16 sps:$4 sm:$0xff]  }
  0x95   :  { %1789 = vmatprep.subr.bf16.mxu1 %v3931_v63  ;;  %v4015_v63 = vld [vmem:[#allocation2 + $0x3ac] ss:$16 sps:$4 sm:$0xff]  }
  0x97   :  { %1749 = vmatpush2.bf16.msra.mxu0 %v3926_v0  ;;  %v4010_v0 = vld [vmem:[#allocation2 + $0x1a8] ss:$16 sps:$4 sm:$0xff]  }
  0x98   :  { %1790 = vmatpush2.bf16.msra.mxu1 %v3929_v1  ;;  %1750 = vmatprep.subr.bf16.mxu0 %v3934_v2  ;;  %v4013_v1 = vld [vmem:[#allocation2 + $0x3a8] ss:$16 sps:$4 sm:$0xff]   ;;  %v4018_v2 = vld [vmem:[#allocation2 + $0x18c] ss:$16 sps:$4 sm:$0xff]  }
  0x99   :  { %1791 = vmatprep.subr.bf16.mxu1 %v3937_v3  ;;  %v4021_v3 = vld [vmem:[#allocation2 + $0x38c] ss:$16 sps:$4 sm:$0xff]  }
  0x9b   :  { %1751 = vmatpush2.bf16.msra.mxu0 %v3932_v4  ;;  %v4016_v4 = vld [vmem:[#allocation2 + $0x188] ss:$16 sps:$4 sm:$0xff]  }
  0x9c   :  { %1792 = vmatpush2.bf16.msra.mxu1 %v3935_v5  ;;  %1752 = vmatprep.subr.bf16.mxu0 %v3940_v6  ;;  %v4019_v5 = vld [vmem:[#allocation2 + $0x388] ss:$16 sps:$4 sm:$0xff]   ;;  %v4024_v6 = vld [vmem:[#allocation2 + $0x16c] ss:$16 sps:$4 sm:$0xff]  }
  0x9d   :  { %1793 = vmatprep.subr.bf16.mxu1 %v3943_v7  ;;  %v4027_v7 = vld [vmem:[#allocation2 + $0x36c] ss:$16 sps:$4 sm:$0xff]  }
  0x9f   :  { %1753 = vmatpush2.bf16.msra.mxu0 %v3938_v10  ;;  %v4022_v10 = vld [vmem:[#allocation2 + $0x168] ss:$16 sps:$4 sm:$0xff]  }
  0xa0   :  { %1794 = vmatpush2.bf16.msra.mxu1 %v3941_v11  ;;  %1754 = vmatprep.subr.bf16.mxu0 %v3946_v12  ;;  %v4025_v11 = vld [vmem:[#allocation2 + $0x368] ss:$16 sps:$4 sm:$0xff]   ;;  %v4030_v12 = vld [vmem:[#allocation2 + $0x14c] ss:$16 sps:$4 sm:$0xff]  }
  0xa1   :  { %1795 = vmatprep.subr.bf16.mxu1 %v3949_v13  ;;  %v4033_v13 = vld [vmem:[#allocation2 + $0x34c] ss:$16 sps:$4 sm:$0xff]  }
  0xa3   :  { %1755 = vmatpush2.bf16.msra.mxu0 %v3944_v14  ;;  %v4028_v14 = vld [vmem:[#allocation2 + $0x148] ss:$16 sps:$4 sm:$0xff]  }
  0xa4   :  { %1796 = vmatpush2.bf16.msra.mxu1 %v3947_v15  ;;  %1806 = vmatprep.subr.bf16.mxu0 %v3952_v18  ;;  %v4031_v15 = vld [vmem:[#allocation2 + $0x348] ss:$16 sps:$4 sm:$0xff]  }
  0xa5   :  { %1847 = vmatprep.subr.bf16.mxu1 %v3955_v19  ;;  %v4034_v18 = vld [vmem:[#allocation2 + $0x128] ss:$16 sps:$4 sm:$0xff]  }
  0xa6   :  { %1757 = vmatmul.mubr.bf16.vlgmr.msra.gmra.mxu0 %v4528_v20  ;;  %v4037_v19 = vld [vmem:[#allocation2 + $0x328] ss:$16 sps:$4 sm:$0xff]  }
  0xa7   :  { %1798 = vmatmul.mubr.bf16.vlgmr.msra.gmra.mxu1 %v4530_v21  ;;  %1807 = vmatpush1.bf16.msra.mxu0 %v3950_v22  ;;  %v4042_v22 = vld [vmem:[#allocation2 + $0x10c] ss:$16 sps:$4 sm:$0xff]  }
  0xa8   :  { %1848 = vmatpush1.bf16.msra.mxu1 %v3953_v23  ;;  %1808 = vmatprep.subr.bf16.mxu0 %v3958_v24  ;;  %v4045_v23 = vld [vmem:[#allocation2 + $0x30c] ss:$16 sps:$4 sm:$0xff]   ;;  %v4040_v24 = vld [vmem:[#allocation2 + $0x108] ss:$16 sps:$4 sm:$0xff]  }
  0xa9   :  { %1849 = vmatprep.subr.bf16.mxu1 %v3961_v25  ;;  %1838 = vmatprep.mubr.bf16.mxu0 %v4489_v49  ;;  %v3977_v49 = vld [vmem:[#allocation2 + $0x268] ss:$16 sps:$4 sm:$0xff]  }
  0xaa   :  { %1879 = vmatprep.mubr.bf16.mxu1 %v4494_v52  ;;  %v3982_v52 = vld [vmem:[#allocation2 + $0x4c] ss:$16 sps:$4 sm:$0xff]   ;;  %v4043_v25 = vld [vmem:[#allocation2 + $0x308] ss:$16 sps:$4 sm:$0xff]  }
  0xab   :  { %1809 = vmatpush1.bf16.msra.mxu0 %v3956_v26  ;;  %v4048_v26 = vld [vmem:[#allocation2 + $0x4ec] ss:$16 sps:$4 sm:$0xff]  }
  0xac   :  { %1850 = vmatpush1.bf16.msra.mxu1 %v3959_v27  ;;  %1810 = vmatprep.subr.bf16.mxu0 %v3964_v28  ;;  %v4051_v27 = vld [vmem:[#allocation2 + $0x6ec] ss:$16 sps:$4 sm:$0xff]   ;;  %v4046_v28 = vld [vmem:[#allocation2 + $0x4e8] ss:$16 sps:$4 sm:$0xff]  }
  0xad   :  { %1851 = vmatprep.subr.bf16.mxu1 %v3967_v29  ;;  %v4049_v29 = vld [vmem:[#allocation2 + $0x6e8] ss:$16 sps:$4 sm:$0xff]  }
  0xaf   :  { %1811 = vmatpush1.bf16.msra.mxu0 %v3962_v30  ;;  %v4054_v30 = vld [vmem:[#allocation2 + $0x4cc] ss:$16 sps:$4 sm:$0xff]  }
  0xb0   :  { %1852 = vmatpush1.bf16.msra.mxu1 %v3965_v31  ;;  %1812 = vmatprep.subr.bf16.mxu0 %v3970_v32  ;;  %v4057_v31 = vld [vmem:[#allocation2 + $0x6cc] ss:$16 sps:$4 sm:$0xff]   ;;  %v4052_v32 = vld [vmem:[#allocation2 + $0x4c8] ss:$16 sps:$4 sm:$0xff]  }
  0xb1   :  { %1853 = vmatprep.subr.bf16.mxu1 %v3973_v33  ;;  %v4055_v33 = vld [vmem:[#allocation2 + $0x6c8] ss:$16 sps:$4 sm:$0xff]  }
  0xb3   :  { %1813 = vmatpush1.bf16.msra.mxu0 %v3968_v34  ;;  %v4060_v34 = vld [vmem:[#allocation2 + $0x4ac] ss:$16 sps:$4 sm:$0xff]  }
  0xb4   :  { %1854 = vmatpush1.bf16.msra.mxu1 %v3971_v35  ;;  %1814 = vmatprep.subr.bf16.mxu0 %v3976_v36  ;;  %v4063_v35 = vld [vmem:[#allocation2 + $0x6ac] ss:$16 sps:$4 sm:$0xff]   ;;  %v4058_v36 = vld [vmem:[#allocation2 + $0x4a8] ss:$16 sps:$4 sm:$0xff]  }
  0xb5   :  { %1855 = vmatprep.subr.bf16.mxu1 %v3979_v38  ;;  %v4061_v38 = vld [vmem:[#allocation2 + $0x6a8] ss:$16 sps:$4 sm:$0xff]  }
  0xb7   :  { %1815 = vmatpush1.bf16.msra.mxu0 %v3974_v39  ;;  %v4066_v39 = vld [vmem:[#allocation2 + $0x48c] ss:$16 sps:$4 sm:$0xff]  }
  0xb8   :  { %1856 = vmatpush1.bf16.msra.mxu1 %v3977_v49  ;;  %1816 = vmatprep.subr.bf16.mxu0 %v3982_v52  ;;  %v4064_v49 = vld [vmem:[#allocation2 + $0x488] ss:$16 sps:$4 sm:$0xff]   ;;  %v4072_v52 = vld [vmem:[#allocation2 + $0x46c] ss:$16 sps:$4 sm:$0xff]  }
  0xb9   :  { %1857 = vmatprep.subr.bf16.mxu1 %v3985_v41  ;;  %v4075_v41 = vld [vmem:[#allocation2 + $0x66c] ss:$16 sps:$4 sm:$0xff]  }
  0xbb   :  { %1817 = vmatpush1.bf16.msra.mxu0 %v3980_v42  ;;  %v4070_v42 = vld [vmem:[#allocation2 + $0x468] ss:$16 sps:$4 sm:$0xff]  }
  0xbc   :  { %1858 = vmatpush1.bf16.msra.mxu1 %v3983_v43  ;;  %1818 = vmatprep.subr.bf16.mxu0 %v3988_v44  ;;  %v4073_v43 = vld [vmem:[#allocation2 + $0x668] ss:$16 sps:$4 sm:$0xff]  }
  0xbd   :  { %1859 = vmatprep.subr.bf16.mxu1 %v3991_v45  ;;  %v4076_v44 = vld [vmem:[#allocation2 + $0x448] ss:$16 sps:$4 sm:$0xff]  }
  0xbe   :  { %v4079_v45 = vld [vmem:[#allocation2 + $0x648] ss:$16 sps:$4 sm:$0xff]  }
  0xbf   :  { %1819 = vmatpush1.bf16.msra.mxu0 %v3986_v46  ;;  %v4084_v46 = vld [vmem:[#allocation2 + $0x42c] ss:$16 sps:$4 sm:$0xff]  }
  0xc0   :  { %1860 = vmatpush1.bf16.msra.mxu1 %v3989_v47  ;;  %1820 = vmatprep.subr.bf16.mxu0 %v3994_v48  ;;  %v4087_v47 = vld [vmem:[#allocation2 + $0x62c] ss:$16 sps:$4 sm:$0xff]   ;;  %v4082_v48 = vld [vmem:[#allocation2 + $0x428] ss:$16 sps:$4 sm:$0xff]  }
  0xc1   :  { %1861 = vmatprep.subr.bf16.mxu1 %v3997_v50  ;;  %v4085_v50 = vld [vmem:[#allocation2 + $0x628] ss:$16 sps:$4 sm:$0xff]  }
  0xc3   :  { %1821 = vmatpush1.bf16.msra.mxu0 %v3992_v51  ;;  %v4090_v51 = vld [vmem:[#allocation2 + $0x40c] ss:$16 sps:$4 sm:$0xff]  }
  0xc4   :  { %1862 = vmatpush1.bf16.msra.mxu1 %v3995_v53  ;;  %1822 = vmatprep.subr.bf16.mxu0 %v4000_v54  ;;  %v4093_v53 = vld [vmem:[#allocation2 + $0x60c] ss:$16 sps:$4 sm:$0xff]   ;;  %v4088_v54 = vld [vmem:[#allocation2 + $0x408] ss:$16 sps:$4 sm:$0xff]  }
  0xc5   :  { %1863 = vmatprep.subr.bf16.mxu1 %v4003_v55  ;;  %v4091_v55 = vld [vmem:[#allocation2 + $0x608] ss:$16 sps:$4 sm:$0xff]  }
  0xc7   :  { %1823 = vmatpush2.bf16.msra.mxu0 %v3998_v56  ;;  %v4096_v56 = vld [vmem:[#allocation2 + $0x5ec] ss:$16 sps:$4 sm:$0xff]  }
  0xc8   :  { %1864 = vmatpush2.bf16.msra.mxu1 %v4001_v57  ;;  %1824 = vmatprep.subr.bf16.mxu0 %v4006_v58  ;;  %v4099_v57 = vld [vmem:[#allocation2 + $0x7ec] ss:$16 sps:$4 sm:$0xff]   ;;  %v4094_v58 = vld [vmem:[#allocation2 + $0x5e8] ss:$16 sps:$4 sm:$0xff]  }
  0xc9   :  { %1865 = vmatprep.subr.bf16.mxu1 %v4009_v59  ;;  %v4097_v59 = vld [vmem:[#allocation2 + $0x7e8] ss:$16 sps:$4 sm:$0xff]  }
  0xcb   :  { %1825 = vmatpush2.bf16.msra.mxu0 %v4004_v60  ;;  %v4102_v60 = vld [vmem:[#allocation2 + $0x5cc] ss:$16 sps:$4 sm:$0xff]  }
  0xcc   :  { %1866 = vmatpush2.bf16.msra.mxu1 %v4007_v61  ;;  %1826 = vmatprep.subr.bf16.mxu0 %v4012_v62  ;;  %v4105_v61 = vld [vmem:[#allocation2 + $0x7cc] ss:$16 sps:$4 sm:$0xff]   ;;  %v4100_v62 = vld [vmem:[#allocation2 + $0x5c8] ss:$16 sps:$4 sm:$0xff]  }
  0xcd   :  { %1867 = vmatprep.subr.bf16.mxu1 %v4015_v63  ;;  %v4103_v63 = vld [vmem:[#allocation2 + $0x7c8] ss:$16 sps:$4 sm:$0xff]  }
  0xcf   :  { %1827 = vmatpush2.bf16.msra.mxu0 %v4010_v0  ;;  %v4108_v0 = vld [vmem:[#allocation2 + $0x5ac] ss:$16 sps:$4 sm:$0xff]  }
  0xd0   :  { %1868 = vmatpush2.bf16.msra.mxu1 %v4013_v1  ;;  %1828 = vmatprep.subr.bf16.mxu0 %v4018_v2  ;;  %v4111_v1 = vld [vmem:[#allocation2 + $0x7ac] ss:$16 sps:$4 sm:$0xff]   ;;  %v4106_v2 = vld [vmem:[#allocation2 + $0x5a8] ss:$16 sps:$4 sm:$0xff]  }
  0xd1   :  { %1869 = vmatprep.subr.bf16.mxu1 %v4021_v3  ;;  %v4109_v3 = vld [vmem:[#allocation2 + $0x7a8] ss:$16 sps:$4 sm:$0xff]  }
  0xd3   :  { %1829 = vmatpush2.bf16.msra.mxu0 %v4016_v4  ;;  %v4114_v4 = vld [vmem:[#allocation2 + $0x58c] ss:$16 sps:$4 sm:$0xff]  }
  0xd4   :  { %1870 = vmatpush2.bf16.msra.mxu1 %v4019_v5  ;;  %1830 = vmatprep.subr.bf16.mxu0 %v4024_v6  ;;  %v4117_v5 = vld [vmem:[#allocation2 + $0x78c] ss:$16 sps:$4 sm:$0xff]   ;;  %v4112_v6 = vld [vmem:[#allocation2 + $0x588] ss:$16 sps:$4 sm:$0xff]  }
  0xd5   :  { %1871 = vmatprep.subr.bf16.mxu1 %v4027_v7  ;;  %v4115_v7 = vld [vmem:[#allocation2 + $0x788] ss:$16 sps:$4 sm:$0xff]  }
  0xd7   :  { %1831 = vmatpush2.bf16.msra.mxu0 %v4022_v10  ;;  %v4120_v10 = vld [vmem:[#allocation2 + $0x56c] ss:$16 sps:$4 sm:$0xff]  }
  0xd8   :  { %1872 = vmatpush2.bf16.msra.mxu1 %v4025_v11  ;;  %1832 = vmatprep.subr.bf16.mxu0 %v4030_v12  ;;  %v4123_v11 = vld [vmem:[#allocation2 + $0x76c] ss:$16 sps:$4 sm:$0xff]   ;;  %v4118_v12 = vld [vmem:[#allocation2 + $0x568] ss:$16 sps:$4 sm:$0xff]  }
  0xd9   :  { %1873 = vmatprep.subr.bf16.mxu1 %v4033_v13  ;;  %v4121_v13 = vld [vmem:[#allocation2 + $0x768] ss:$16 sps:$4 sm:$0xff]  }
  0xdb   :  { %1833 = vmatpush2.bf16.msra.mxu0 %v4028_v14  ;;  %v4126_v14 = vld [vmem:[#allocation2 + $0x54c] ss:$16 sps:$4 sm:$0xff]  }
  0xdc   :  { %1874 = vmatpush2.bf16.msra.mxu1 %v4031_v15  ;;  %1834 = vmatprep.subr.bf16.mxu0 %v4036_v16  ;;  %v4129_v15 = vld [vmem:[#allocation2 + $0x74c] ss:$16 sps:$4 sm:$0xff]   ;;  %v4124_v16 = vld [vmem:[#allocation2 + $0x548] ss:$16 sps:$4 sm:$0xff]  }
  0xdd   :  { %1875 = vmatprep.subr.bf16.mxu1 %v4039_v17  ;;  %v4127_v17 = vld [vmem:[#allocation2 + $0x748] ss:$16 sps:$4 sm:$0xff]  }
  0xdf   :  { %1835 = vmatpush2.bf16.msra.mxu0 %v4034_v18  ;;  %v4132_v18 = vld [vmem:[#allocation2 + $0x52c] ss:$16 sps:$4 sm:$0xff]  }
  0xe0   :  { %1876 = vmatpush2.bf16.msra.mxu1 %v4037_v19  ;;  %1836 = vmatprep.subr.bf16.mxu0 %v4042_v22  ;;  %v4135_v19 = vld [vmem:[#allocation2 + $0x72c] ss:$16 sps:$4 sm:$0xff]   ;;  %v4130_v22 = vld [vmem:[#allocation2 + $0x528] ss:$16 sps:$4 sm:$0xff]  }
  0xe1   :  { %1877 = vmatprep.subr.bf16.mxu1 %v4045_v23  ;;  %v4133_v23 = vld [vmem:[#allocation2 + $0x728] ss:$16 sps:$4 sm:$0xff]  }
  0xe3   :  { %1837 = vmatpush2.bf16.msra.mxu0 %v4040_v24  ;;  %v4138_v24 = vld [vmem:[#allocation2 + $0x50c] ss:$16 sps:$4 sm:$0xff]  }
  0xe4   :  { %1878 = vmatpush2.bf16.msra.mxu1 %v4043_v25  ;;  %1888 = vmatprep.subr.bf16.mxu0 %v4048_v26  ;;  %v4141_v25 = vld [vmem:[#allocation2 + $0x70c] ss:$16 sps:$4 sm:$0xff]   ;;  %v4136_v26 = vld [vmem:[#allocation2 + $0x508] ss:$16 sps:$4 sm:$0xff]  }
  0xe5   :  { %1929 = vmatprep.subr.bf16.mxu1 %v4051_v27  ;;  %v4139_v27 = vld [vmem:[#allocation2 + $0x708] ss:$16 sps:$4 sm:$0xff]  }
  0xe6   :  { %1839 = vmatmul.mubr.bf16.vlgmr.msra.gmra.mxu0 %v4504_v8  ;;  %v4069_v8 = vld [vmem:[#allocation2 + $0x68c] ss:$16 sps:$4 sm:$0xff]  }
  0xe7   :  { %1880 = vmatmul.mubr.bf16.vlgmr.msra.gmra.mxu1 %v4506_v9  ;;  %1889 = vmatpush1.bf16.msra.mxu0 %v4046_v28  ;;  %v4067_v9 = vld [vmem:[#allocation2 + $0x688] ss:$16 sps:$4 sm:$0xff]   ;;  %v4144_v28 = vld [vmem:[#allocation4 + $0xe4] ss:$16 sps:$4 sm:$0xff]  }
  0xe8   :  { %1930 = vmatpush1.bf16.msra.mxu1 %v4049_v29  ;;  %1890 = vmatprep.subr.bf16.mxu0 %v4054_v30  ;;  %v4142_v29 = vld [vmem:[#allocation4 + $0xe0] ss:$16 sps:$4 sm:$0xff]   ;;  %v4147_v30 = vld [vmem:[#allocation4 + $0xc4] ss:$16 sps:$4 sm:$0xff]  }
  0xe9   :  { %1931 = vmatprep.subr.bf16.mxu1 %v4057_v31  ;;  %1920 = vmatprep.mubr.bf16.mxu0 %v4513_v37  ;;  %v4078_v37 = vld [vmem:[#allocation2 + $0x44c] ss:$16 sps:$4 sm:$0xff]  }
  0xea   :  { %1961 = vmatprep.mubr.bf16.mxu1 %v4518_v40  ;;  %v4081_v40 = vld [vmem:[#allocation2 + $0x64c] ss:$16 sps:$4 sm:$0xff]  }
  0xeb   :  { %1891 = vmatpush1.bf16.msra.mxu0 %v4052_v32 }
  0xec   :  { %1932 = vmatpush1.bf16.msra.mxu1 %v4055_v33  ;;  %1892 = vmatprep.subr.bf16.mxu0 %v4060_v34  ;;  %v4145_v33 = vld [vmem:[#allocation4 + $0xc0] ss:$16 sps:$4 sm:$0xff]  }
  0xed   :  { %1933 = vmatprep.subr.bf16.mxu1 %v4063_v35 }
  0xef   :  { %1893 = vmatpush1.bf16.msra.mxu0 %v4058_v36  ;;  %v4150_v36 = vld [vmem:[#allocation4 + $0xa4] ss:$16 sps:$4 sm:$0xff]  }
  0xf0   :  { %1934 = vmatpush1.bf16.msra.mxu1 %v4061_v38  ;;  %1894 = vmatprep.subr.bf16.mxu0 %v4066_v39 }
  0xf1   :  { %1935 = vmatprep.subr.bf16.mxu1 %v4069_v8  ;;  %v4148_v8 = vld [vmem:[#allocation4 + $0xa0] ss:$16 sps:$4 sm:$0xff]  }
  0xf3   :  { %1895 = vmatpush1.bf16.msra.mxu0 %v4064_v49 }
  0xf4   :  { %1936 = vmatpush1.bf16.msra.mxu1 %v4067_v9  ;;  %1896 = vmatprep.subr.bf16.mxu0 %v4072_v52  ;;  %v4153_v52 = vld [vmem:[#allocation4 + $0x84] ss:$16 sps:$4 sm:$0xff]  }
  0xf5   :  { %1937 = vmatprep.subr.bf16.mxu1 %v4075_v41  ;;  %v4238_v41 = vld [vmem:[#allocation4 + $0x2e0] ss:$16 sps:$4 sm:$0xff]  }
  0xf7   :  { %1897 = vmatpush1.bf16.msra.mxu0 %v4070_v42  ;;  %v4156_v42 = vld [vmem:[#allocation4 + $0x64] ss:$16 sps:$4 sm:$0xff]  }
  0xf8   :  { %1938 = vmatpush1.bf16.msra.mxu1 %v4073_v43  ;;  %1898 = vmatprep.subr.bf16.mxu0 %v4078_v37  ;;  %v4241_v43 = vld [vmem:[#allocation4 + $0x2c0] ss:$16 sps:$4 sm:$0xff]   ;;  %v4243_v37 = vld [vmem:[#allocation4 + $0x2c4] ss:$16 sps:$4 sm:$0xff]  }
  0xf9   :  { %1939 = vmatprep.subr.bf16.mxu1 %v4081_v40  ;;  %v4154_v40 = vld [vmem:[#allocation4 + $0x60] ss:$16 sps:$4 sm:$0xff]  }
  0xfb   :  { %1899 = vmatpush1.bf16.msra.mxu0 %v4076_v44  ;;  %v4246_v44 = vld [vmem:[#allocation4 + $0x2a4] ss:$16 sps:$4 sm:$0xff]  }
  0xfc   :  { %1940 = vmatpush1.bf16.msra.mxu1 %v4079_v45  ;;  %1900 = vmatprep.subr.bf16.mxu0 %v4084_v46  ;;  %v4159_v45 = vld [vmem:[#allocation4 + $0x44] ss:$16 sps:$4 sm:$0xff]   ;;  %v4244_v46 = vld [vmem:[#allocation4 + $0x2a0] ss:$16 sps:$4 sm:$0xff]  }
  0xfd   :  { %1941 = vmatprep.subr.bf16.mxu1 %v4087_v47  ;;  %v4157_v47 = vld [vmem:[#allocation4 + $0x40] ss:$16 sps:$4 sm:$0xff]  }
  0xff   :  { %1901 = vmatpush1.bf16.msra.mxu0 %v4082_v48  ;;  %v4249_v48 = vld [vmem:[#allocation4 + $0x284] ss:$16 sps:$4 sm:$0xff]  }
 0x100   :  { %1942 = vmatpush1.bf16.msra.mxu1 %v4085_v50  ;;  %1902 = vmatprep.subr.bf16.mxu0 %v4090_v51  ;;  %v4162_v50 = vld [vmem:[#allocation4 + $0x24] ss:$16 sps:$4 sm:$0xff]   ;;  %v4247_v51 = vld [vmem:[#allocation4 + $0x280] ss:$16 sps:$4 sm:$0xff]  }
 0x101   :  { %1943 = vmatprep.subr.bf16.mxu1 %v4093_v53  ;;  %v4160_v53 = vld [vmem:[#allocation4 + $0x20] ss:$16 sps:$4 sm:$0xff]  }
 0x103   :  { %1903 = vmatpush1.bf16.msra.mxu0 %v4088_v54  ;;  %v4252_v54 = vld [vmem:[#allocation4 + $0x264] ss:$16 sps:$4 sm:$0xff]  }
 0x104   :  { %1944 = vmatpush1.bf16.msra.mxu1 %v4091_v55  ;;  %1904 = vmatprep.subr.bf16.mxu0 %v4096_v56  ;;  %v4165_v55 = vld [vmem:[#allocation4 + $0x4] ss:$16 sps:$4 sm:$0xff]   ;;  %v4250_v56 = vld [vmem:[#allocation4 + $0x260] ss:$16 sps:$4 sm:$0xff]  }
 0x105   :  { %1945 = vmatprep.subr.bf16.mxu1 %v4099_v57  ;;  %v4163_v57 = vld [vmem:[#allocation4] ss:$16 sps:$4 sm:$0xff]  }
 0x107   :  { %1905 = vmatpush2.bf16.msra.mxu0 %v4094_v58  ;;  %v4255_v58 = vld [vmem:[#allocation4 + $0x244] ss:$16 sps:$4 sm:$0xff]  }
 0x108   :  { %1946 = vmatpush2.bf16.msra.mxu1 %v4097_v59  ;;  %1906 = vmatprep.subr.bf16.mxu0 %v4102_v60  ;;  %v4168_v59 = vld [vmem:[#allocation4 + $0x1e4] ss:$16 sps:$4 sm:$0xff]   ;;  %v4253_v60 = vld [vmem:[#allocation4 + $0x240] ss:$16 sps:$4 sm:$0xff]  }
 0x109   :  { %1947 = vmatprep.subr.bf16.mxu1 %v4105_v61  ;;  %v4166_v61 = vld [vmem:[#allocation4 + $0x1e0] ss:$16 sps:$4 sm:$0xff]  }
 0x10b   :  { %1907 = vmatpush2.bf16.msra.mxu0 %v4100_v62  ;;  %v4258_v62 = vld [vmem:[#allocation4 + $0x224] ss:$16 sps:$4 sm:$0xff]  }
 0x10c   :  { %1948 = vmatpush2.bf16.msra.mxu1 %v4103_v63  ;;  %1908 = vmatprep.subr.bf16.mxu0 %v4108_v0  ;;  %v4171_v63 = vld [vmem:[#allocation4 + $0x1c4] ss:$16 sps:$4 sm:$0xff]   ;;  %v4256_v0 = vld [vmem:[#allocation4 + $0x220] ss:$16 sps:$4 sm:$0xff]  }
 0x10d   :  { %1949 = vmatprep.subr.bf16.mxu1 %v4111_v1  ;;  %v4169_v1 = vld [vmem:[#allocation4 + $0x1c0] ss:$16 sps:$4 sm:$0xff]  }
 0x10f   :  { %1909 = vmatpush2.bf16.msra.mxu0 %v4106_v2  ;;  %v4261_v2 = vld [vmem:[#allocation4 + $0x204] ss:$16 sps:$4 sm:$0xff]  }
 0x110   :  { %1950 = vmatpush2.bf16.msra.mxu1 %v4109_v3  ;;  %1910 = vmatprep.subr.bf16.mxu0 %v4114_v4  ;;  %v4174_v3 = vld [vmem:[#allocation4 + $0x1a4] ss:$16 sps:$4 sm:$0xff]   ;;  %v4259_v4 = vld [vmem:[#allocation4 + $0x200] ss:$16 sps:$4 sm:$0xff]  }
 0x111   :  { %1951 = vmatprep.subr.bf16.mxu1 %v4117_v5  ;;  %v4172_v5 = vld [vmem:[#allocation4 + $0x1a0] ss:$16 sps:$4 sm:$0xff]  }
 0x113   :  { %1911 = vmatpush2.bf16.msra.mxu0 %v4112_v6  ;;  %v4264_v6 = vld [vmem:[#allocation4 + $0x3e4] ss:$16 sps:$4 sm:$0xff]  }
 0x114   :  { %1952 = vmatpush2.bf16.msra.mxu1 %v4115_v7  ;;  %1912 = vmatprep.subr.bf16.mxu0 %v4120_v10  ;;  %v4177_v7 = vld [vmem:[#allocation4 + $0x184] ss:$16 sps:$4 sm:$0xff]   ;;  %v4262_v10 = vld [vmem:[#allocation4 + $0x3e0] ss:$16 sps:$4 sm:$0xff]  }
 0x115   :  { %1953 = vmatprep.subr.bf16.mxu1 %v4123_v11  ;;  %v4175_v11 = vld [vmem:[#allocation4 + $0x180] ss:$16 sps:$4 sm:$0xff]  }
 0x117   :  { %1913 = vmatpush2.bf16.msra.mxu0 %v4118_v12  ;;  %v4267_v12 = vld [vmem:[#allocation4 + $0x3c4] ss:$16 sps:$4 sm:$0xff]  }
 0x118   :  { %1954 = vmatpush2.bf16.msra.mxu1 %v4121_v13  ;;  %1914 = vmatprep.subr.bf16.mxu0 %v4126_v14  ;;  %v4180_v13 = vld [vmem:[#allocation4 + $0x164] ss:$16 sps:$4 sm:$0xff]   ;;  %v342_v14 = vlaneseq }
 0x119   :  { %1955 = vmatprep.subr.bf16.mxu1 %v4129_v15  ;;  %v4265_v15 = vld [vmem:[#allocation4 + $0x3c0] ss:$16 sps:$4 sm:$0xff]  }
 0x11b   :  { %1915 = vmatpush2.bf16.msra.mxu0 %v4124_v16  ;;  %v4178_v16 = vld [vmem:[#allocation4 + $0x160] ss:$16 sps:$4 sm:$0xff]  }
 0x11c   :  { %1956 = vmatpush2.bf16.msra.mxu1 %v4127_v17  ;;  %1916 = vmatprep.subr.bf16.mxu0 %v4132_v18  ;;  %v4270_v17 = vld [vmem:[#allocation4 + $0x3a4] ss:$16 sps:$4 sm:$0xff]  }
 0x11d   :  { %1957 = vmatprep.subr.bf16.mxu1 %v4135_v19  ;;  %v4183_v18 = vld [vmem:[#allocation4 + $0x144] ss:$16 sps:$4 sm:$0xff]   ;;  %v4550_v19 = vshrl.u32 %v342_v14, 7  ;;  %v4216_v14 = vld [vmem:[#allocation4 + $0x1ec] ss:$16 sps:$4 sm:$0xff]  }
 0x11f   :  { %1917 = vmatpush2.bf16.msra.mxu0 %v4130_v22  ;;  %v4268_v22 = vld [vmem:[#allocation4 + $0x3a0] ss:$16 sps:$4 sm:$0xff]  }
 0x120   :  { %1958 = vmatpush2.bf16.msra.mxu1 %v4133_v23  ;;  %1918 = vmatprep.subr.bf16.mxu0 %v4138_v24  ;;  %v4181_v23 = vld [vmem:[#allocation4 + $0x140] ss:$16 sps:$4 sm:$0xff]   ;;  %v4273_v24 = vld [vmem:[#allocation4 + $0x384] ss:$16 sps:$4 sm:$0xff]  }
 0x121   :  { %1959 = vmatprep.subr.bf16.mxu1 %v4141_v25  ;;  %v4186_v25 = vld [vmem:[#allocation4 + $0x124] ss:$16 sps:$4 sm:$0xff]  }
 0x123   :  { %1919 = vmatpush2.bf16.msra.mxu0 %v4136_v26  ;;  %v344_v26 = vsub.s32 0, %v4550_v19 }
 0x124   :  { %1960 = vmatpush2.bf16.msra.mxu1 %v4139_v27  ;;  %2768 = vmatprep.subr.bf16.mxu0 %v4144_v28  ;;  %v4556_v27 = vld [vmem:[%s4604_s2] sm:$0xf] }
 0x125   :  { %v4271_v28 = vld [vmem:[#allocation4 + $0x380] ss:$16 sps:$4 sm:$0xff]  }
 0x126   :  { %v4540_v31 = vpop.f32.mrf.mxu0  ;;  %1921 = vmatmul.mubr.bf16.vlgmr.msra.gmra.mxu0 %v4528_v20  ;;  %v4151_v20 = vld [vmem:[#allocation4 + $0x80] ss:$16 sps:$4 sm:$0xff]  }
 0x127   :  { %v4542_v32 = vpop.f32.mrf.mxu1  ;;  %1962 = vmatmul.mubr.bf16.vlgmr.msra.gmra.mxu1 %v4530_v21  ;;  %2769 = vmatpush1.bf16.msra.mxu0 %v4142_v29  ;;  %v4240_v21 = vld [vmem:[#allocation4 + $0x2e4] ss:$16 sps:$4 sm:$0xff]   ;;  %v348_v29 = vsub.s32 1, %v4550_v19 }
 0x128   :  { %v4546_v34 = vpop.f32.mrf.mxu0  ;;  %2770 = vmatprep.subr.bf16.mxu0 %v4147_v30  ;;  %2809 = vmatprep.subr.bf16.mxu1 %v4240_v21  ;;  %v4184_v30 = vld [vmem:[#allocation4 + $0x120] ss:$16 sps:$4 sm:$0xff]  }
 0x129   :  { %v4548_v35 = vpop.f32.mrf.mxu1  ;;  %2810 = vmatpush1.bf16.msra.mxu1 %v4238_v41  ;;  %v4277_v41 = vld [vmem:[#allocation4 + $0x340] ss:$16 sps:$4 sm:$0xff]  }
 0x12a   :  { %v1680_v38 = vpop.f32.mrf.mxu0  ;;  %2811 = vmatprep.subr.bf16.mxu1 %v4243_v37 }
 0x12b   :  { %v1721_v39 = vpop.f32.mrf.mxu1  ;;  %2771 = vmatpush1.bf16.msra.mxu0 %v4145_v33  ;;  %v4276_v33 = vld [vmem:[#allocation4 + $0x364] ss:$16 sps:$4 sm:$0xff]   ;;  %v345_v38 = vrot.slane %v4556_v27, %v344_v26 }
 0x12c   :  { %v1681_v49 = vpop.f32.mrf.mxu0  ;;  %2772 = vmatprep.subr.bf16.mxu0 %v4150_v36  ;;  %v4189_v36 = vld [vmem:[#allocation4 + $0x104] ss:$16 sps:$4 sm:$0xff]   ;;  %v4274_v39 = vld [vmem:[#allocation4 + $0x360] ss:$16 sps:$4 sm:$0xff]  }
 0x12d   :  { %v1722_v9 = vpop.f32.mrf.mxu1  ;;  %2812 = vmatpush1.bf16.msra.mxu1 %v4241_v43  ;;  %v4187_v49 = vld [vmem:[#allocation4 + $0x100] ss:$16 sps:$4 sm:$0xff]  }
 0x12e   :  { %2813 = vmatprep.subr.bf16.mxu1 %v4246_v44  ;;  %v4279_v9 = vld [vmem:[#allocation4 + $0x344] ss:$16 sps:$4 sm:$0xff]  }
 0x12f   :  { %2773 = vmatpush1.bf16.msra.mxu0 %v4148_v8  ;;  %v349_v8 = vrot.slane %v4556_v27, %v348_v29 }
 0x130   :  { %2774 = vmatprep.subr.bf16.mxu0 %v4153_v52  ;;  %v4192_v52 = vld [vmem:[#allocation4 + $0xec] ss:$16 sps:$4 sm:$0xff]  }
 0x131   :  { %2814 = vmatpush1.bf16.msra.mxu1 %v4244_v46  ;;  %v1679_v21 = vadd.f32 %v4546_v34, %v349_v8  ;;  %v4232_v8 = vld [vmem:[#allocation4 + $0x128] ss:$16 sps:$4 sm:$0xff]  }
 0x132   :  { %2815 = vmatprep.subr.bf16.mxu1 %v4249_v48 }
 0x133   :  { %2775 = vmatpush1.bf16.msra.mxu0 %v4151_v20  ;;  %v1677_v20 = vadd.f32 %v4540_v31, %v345_v38 }
 0x134   :  { %2776 = vmatprep.subr.bf16.mxu0 %v4156_v42 }
 0x135   :  { %2816 = vmatpush1.bf16.msra.mxu1 %v4247_v51  ;;  %v1718_v42 = vadd.f32 %v4542_v32, %v1677_v20 }
 0x136   :  { %2817 = vmatprep.subr.bf16.mxu1 %v4252_v54 }
 0x137   :  { %2777 = vmatpush1.bf16.msra.mxu0 %v4154_v40  ;;  %v1720_v40 = vadd.f32 %v4548_v35, %v1679_v21  ;;  %v4235_v21 = vld [vmem:[#allocation4 + $0x108] ss:$16 sps:$4 sm:$0xff]  }
 0x138   :  { %2778 = vmatprep.subr.bf16.mxu0 %v4159_v45 }
 0x139   :  { %2818 = vmatpush1.bf16.msra.mxu1 %v4250_v56  ;;  %v4285_v56 = vld [vmem:[#allocation4 + $0x304] ss:$16 sps:$4 sm:$0xff]  }
 0x13a   :  { %2819 = vmatprep.subr.bf16.mxu1 %v4255_v58  ;;  %v4283_v58 = vld [vmem:[#allocation4 + $0x300] ss:$16 sps:$4 sm:$0xff]  }
 0x13b   :  { %2779 = vmatpush1.bf16.msra.mxu0 %v4157_v47  ;;  %v4282_v47 = vld [vmem:[#allocation4 + $0x324] ss:$16 sps:$4 sm:$0xff]  }
 0x13c   :  { %2780 = vmatprep.subr.bf16.mxu0 %v4162_v50  ;;  %v4280_v50 = vld [vmem:[#allocation4 + $0x320] ss:$16 sps:$4 sm:$0xff]  }
 0x13d   :  { %2820 = vmatpush1.bf16.msra.mxu1 %v4253_v60 }
 0x13e   :  { %2821 = vmatprep.subr.bf16.mxu1 %v4258_v62  ;;  %v4288_v62 = vld [vmem:[#allocation4 + $0x2ec] ss:$16 sps:$4 sm:$0xff]  }
 0x13f   :  { %2781 = vmatpush1.bf16.msra.mxu0 %v4160_v53 }
 0x140   :  { %2782 = vmatprep.subr.bf16.mxu0 %v4165_v55 }
 0x141   :  { %2822 = vmatpush1.bf16.msra.mxu1 %v4256_v0  ;;  %v4198_v0 = vld [vmem:[#allocation4 + $0xac] ss:$16 sps:$4 sm:$0xff]  }
 0x142   :  { %2823 = vmatprep.subr.bf16.mxu1 %v4261_v2  ;;  %v4201_v2 = vld [vmem:[#allocation4 + $0x8c] ss:$16 sps:$4 sm:$0xff]  }
 0x143   :  { %2783 = vmatpush1.bf16.msra.mxu0 %v4163_v57 }
 0x144   :  { %2784 = vmatprep.subr.bf16.mxu0 %v4168_v59  ;;  %v4190_v59 = vld [vmem:[#allocation4 + $0xe8] ss:$16 sps:$4 sm:$0xff]  }
 0x145   :  { %2824 = vmatpush1.bf16.msra.mxu1 %v4259_v4  ;;  %v4204_v4 = vld [vmem:[#allocation4 + $0x6c] ss:$16 sps:$4 sm:$0xff]  }
 0x146   :  { %2825 = vmatprep.subr.bf16.mxu1 %v4264_v6  ;;  %v4207_v6 = vld [vmem:[#allocation4 + $0x4c] ss:$16 sps:$4 sm:$0xff]  }
 0x147   :  { %2785 = vmatpush2.bf16.msra.mxu0 %v4166_v61  ;;  %v4195_v61 = vld [vmem:[#allocation4 + $0xcc] ss:$16 sps:$4 sm:$0xff]  }
 0x148   :  { %2786 = vmatprep.subr.bf16.mxu0 %v4171_v63  ;;  %v4193_v63 = vld [vmem:[#allocation4 + $0xc8] ss:$16 sps:$4 sm:$0xff]  }
 0x149   :  { %2826 = vmatpush2.bf16.msra.mxu1 %v4262_v10  ;;  %v4210_v10 = vld [vmem:[#allocation4 + $0x2c] ss:$16 sps:$4 sm:$0xff]  }
 0x14a   :  { %2827 = vmatprep.subr.bf16.mxu1 %v4267_v12  ;;  %v4213_v12 = vld [vmem:[#allocation4 + $0xc] ss:$16 sps:$4 sm:$0xff]  }
 0x14b   :  { %2787 = vmatpush2.bf16.msra.mxu0 %v4169_v1  ;;  %v4196_v1 = vld [vmem:[#allocation4 + $0xa8] ss:$16 sps:$4 sm:$0xff]  }
 0x14c   :  { %2788 = vmatprep.subr.bf16.mxu0 %v4174_v3  ;;  %v4199_v3 = vld [vmem:[#allocation4 + $0x88] ss:$16 sps:$4 sm:$0xff]  }
 0x14d   :  { %2828 = vmatpush2.bf16.msra.mxu1 %v4265_v15  ;;  %v4214_v15 = vld [vmem:[#allocation4 + $0x1e8] ss:$16 sps:$4 sm:$0xff]  }
 0x14e   :  { %2829 = vmatprep.subr.bf16.mxu1 %v4270_v17  ;;  %v4217_v17 = vld [vmem:[#allocation4 + $0x1c8] ss:$16 sps:$4 sm:$0xff]  }
 0x14f   :  { %2789 = vmatpush2.bf16.msra.mxu0 %v4172_v5  ;;  %v4202_v5 = vld [vmem:[#allocation4 + $0x68] ss:$16 sps:$4 sm:$0xff]  }
 0x150   :  { %2790 = vmatprep.subr.bf16.mxu0 %v4177_v7  ;;  %v4205_v7 = vld [vmem:[#allocation4 + $0x48] ss:$16 sps:$4 sm:$0xff]  }
 0x151   :  { %2830 = vmatpush2.bf16.msra.mxu1 %v4268_v22  ;;  %v4220_v22 = vld [vmem:[#allocation4 + $0x1a8] ss:$16 sps:$4 sm:$0xff]  }
 0x152   :  { %2831 = vmatprep.subr.bf16.mxu1 %v4273_v24  ;;  %v4223_v24 = vld [vmem:[#allocation4 + $0x188] ss:$16 sps:$4 sm:$0xff]  }
 0x153   :  { %2791 = vmatpush2.bf16.msra.mxu0 %v4175_v11  ;;  %v4208_v11 = vld [vmem:[#allocation4 + $0x28] ss:$16 sps:$4 sm:$0xff]  }
 0x154   :  { %2792 = vmatprep.subr.bf16.mxu0 %v4180_v13  ;;  %v4211_v13 = vld [vmem:[#allocation4 + $0x8] ss:$16 sps:$4 sm:$0xff]  }
 0x155   :  { %2832 = vmatpush2.bf16.msra.mxu1 %v4271_v28  ;;  %v4226_v28 = vld [vmem:[#allocation4 + $0x168] ss:$16 sps:$4 sm:$0xff]  }
 0x156   :  { %2833 = vmatprep.subr.bf16.mxu1 %v4276_v33  ;;  %v4229_v33 = vld [vmem:[#allocation4 + $0x148] ss:$16 sps:$4 sm:$0xff]  }
 0x157   :  { %2793 = vmatpush2.bf16.msra.mxu0 %v4178_v16  ;;  %v4219_v16 = vld [vmem:[#allocation4 + $0x1cc] ss:$16 sps:$4 sm:$0xff]  }
 0x158   :  { %2794 = vmatprep.subr.bf16.mxu0 %v4183_v18  ;;  %v4222_v18 = vld [vmem:[#allocation4 + $0x1ac] ss:$16 sps:$4 sm:$0xff]  }
 0x159   :  { %2834 = vmatpush2.bf16.msra.mxu1 %v4274_v39 }
 0x15a   :  { %2835 = vmatprep.subr.bf16.mxu1 %v4279_v9 }
 0x15b   :  { %2795 = vmatpush2.bf16.msra.mxu0 %v4181_v23  ;;  %v4225_v23 = vld [vmem:[#allocation4 + $0x18c] ss:$16 sps:$4 sm:$0xff]  }
 0x15c   :  { %2796 = vmatprep.subr.bf16.mxu0 %v4186_v25  ;;  %v4228_v25 = vld [vmem:[#allocation4 + $0x16c] ss:$16 sps:$4 sm:$0xff]  }
 0x15d   :  { %2836 = vmatpush2.bf16.msra.mxu1 %v4277_v41 }
 0x15e   :  { %2837 = vmatprep.subr.bf16.mxu1 %v4282_v47 }
 0x15f   :  { %2797 = vmatpush2.bf16.msra.mxu0 %v4184_v30  ;;  %v4231_v30 = vld [vmem:[#allocation4 + $0x14c] ss:$16 sps:$4 sm:$0xff]  }
 0x160   :  { %2798 = vmatprep.subr.bf16.mxu0 %v4189_v36  ;;  %v4234_v36 = vld [vmem:[#allocation4 + $0x12c] ss:$16 sps:$4 sm:$0xff]  }
 0x161   :  { %2838 = vmatpush2.bf16.msra.mxu1 %v4280_v50 }
 0x162   :  { %2839 = vmatprep.subr.bf16.mxu1 %v4285_v56 }
 0x163   :  { %2799 = vmatpush2.bf16.msra.mxu0 %v4187_v49 }
 0x164   :  { %2850 = vmatprep.subr.bf16.mxu0 %v4192_v52  ;;  %v4237_v52 = vld [vmem:[#allocation4 + $0x10c] ss:$16 sps:$4 sm:$0xff]  }
 0x165   :  { %2840 = vmatpush2.bf16.msra.mxu1 %v4283_v58 }
 0x166   :  { %v1758_v43 = vpop.f32.mrf.mxu0  ;;  %2891 = vmatprep.subr.bf16.mxu1 %v4288_v62 }
 0x167   :  { %v1799_v37 = vpop.f32.mrf.mxu1  ;;  %v1759_v44 = vadd.f32 %v1758_v43, %v1718_v42 }
 0x168   :  { %v1760_v45 = vpop.f32.mrf.mxu0 }
 0x169   :  { %v1801_v46 = vpop.f32.mrf.mxu1  ;;  %v1800_v48 = vadd.f32 %v1799_v37, %v1759_v44  ;;  %v1761_v31 = vadd.f32 %v1760_v45, %v1720_v40  ;;  %v352_v37 = vsub.s32 2, %v4550_v19  ;;  %v356_v40 = vsub.s32 3, %v4550_v19 }
 0x16a   :  { %v1762_v51 = vpop.f32.mrf.mxu0 }
 0x16b   :  { %v1803_v53 = vpop.f32.mrf.mxu1  ;;  %v1802_v34 = vadd.f32 %v1801_v46, %v1761_v31  ;;  %v1970_v54 = vmax.f32 %v1800_v48, 0.0  ;;  %v353_v44 = vrot.slane %v4556_v27, %v352_v37  ;;  %v357_v45 = vrot.slane %v4556_v27, %v356_v40  ;;  %v4286_v27 = vld [vmem:[#allocation4 + $0x2e8] ss:$16 sps:$4 sm:$0xff]  }
 0x16c   :  { %v1763_v55 = vpop.f32.mrf.mxu0 }
 0x16d   :  { %v1804_v32 = vpop.f32.mrf.mxu1  ;;  %v1971_v57 = vmax.f32 %v1802_v34, 0.0  ;;  %v4569_v60 = vpack.c.bf16 %v1970_v54, %v1970_v54 }
 0x16f   :  { %v1975_v35 = vpack.c.bf16 %v1971_v57, %v1971_v57 }
 0x171   :  { %2800 = vmatprep.mubr.bf16.mxu0 %v1975_v35 }
 0x172   :  { %2801 = vmatmul.mubr.bf16.vlgmr.msra.gmra.mxu0 %v4569_v60 }
 0x173   :  { %2851 = vmatpush1.bf16.msra.mxu0 %v4190_v59  ;;  %2882 = vmatprep.mubr.bf16.mxu0 %v1975_v35 }
 0x174   :  { %2852 = vmatprep.subr.bf16.mxu0 %v4195_v61 }
 0x177   :  { %2853 = vmatpush1.bf16.msra.mxu0 %v4193_v63 }
 0x178   :  { %2854 = vmatprep.subr.bf16.mxu0 %v4198_v0  ;;  %v4291_v0 = vld [vmem:[#allocation4 + $0x2cc] ss:$16 sps:$4 sm:$0xff]  }
 0x17b   :  { %2855 = vmatpush1.bf16.msra.mxu0 %v4196_v1  ;;  %v4289_v1 = vld [vmem:[#allocation4 + $0x2c8] ss:$16 sps:$4 sm:$0xff]  }
 0x17c   :  { %2856 = vmatprep.subr.bf16.mxu0 %v4201_v2  ;;  %v4294_v2 = vld [vmem:[#allocation4 + $0x2ac] ss:$16 sps:$4 sm:$0xff]  }
 0x17f   :  { %2857 = vmatpush1.bf16.msra.mxu0 %v4199_v3  ;;  %v4292_v3 = vld [vmem:[#allocation4 + $0x2a8] ss:$16 sps:$4 sm:$0xff]  }
 0x180   :  { %2858 = vmatprep.subr.bf16.mxu0 %v4204_v4  ;;  %v4297_v4 = vld [vmem:[#allocation4 + $0x28c] ss:$16 sps:$4 sm:$0xff]  }
 0x183   :  { %2859 = vmatpush1.bf16.msra.mxu0 %v4202_v5  ;;  %v4334_v5 = vld [vmem:[#allocation6 + $0x78] sm:$0xff]  }
 0x184   :  { %2860 = vmatprep.subr.bf16.mxu0 %v4207_v6  ;;  %v4335_v6 = vld [vmem:[#allocation6 + $0x38] sm:$0xff]  }
 0x187   :  { %2861 = vmatpush1.bf16.msra.mxu0 %v4205_v7  ;;  %v4336_v7 = vld [vmem:[#allocation6 + $0x70] sm:$0xff]  }
 0x188   :  { %2862 = vmatprep.subr.bf16.mxu0 %v4210_v10  ;;  %v4295_v10 = vld [vmem:[#allocation4 + $0x288] ss:$16 sps:$4 sm:$0xff]  }
 0x18b   :  { %2863 = vmatpush1.bf16.msra.mxu0 %v4208_v11  ;;  %v4337_v11 = vld [vmem:[#allocation6 + $0x30] sm:$0xff]  }
 0x18c   :  { %2864 = vmatprep.subr.bf16.mxu0 %v4213_v12  ;;  %v4300_v12 = vld [vmem:[#allocation4 + $0x26c] ss:$16 sps:$4 sm:$0xff]  }
 0x18f   :  { %2865 = vmatpush1.bf16.msra.mxu0 %v4211_v13  ;;  %v4338_v13 = vld [vmem:[#allocation6 + $0x68] sm:$0xff]  }
 0x190   :  { %2866 = vmatprep.subr.bf16.mxu0 %v4216_v14  ;;  %v4298_v14 = vld [vmem:[#allocation4 + $0x268] ss:$16 sps:$4 sm:$0xff]  }
 0x193   :  { %2867 = vmatpush2.bf16.msra.mxu0 %v4214_v15  ;;  %v4339_v15 = vld [vmem:[#allocation6 + $0x28] sm:$0xff]  }
 0x194   :  { %2868 = vmatprep.subr.bf16.mxu0 %v4219_v16  ;;  %v4303_v16 = vld [vmem:[#allocation4 + $0x24c] ss:$16 sps:$4 sm:$0xff]  }
 0x197   :  { %2869 = vmatpush2.bf16.msra.mxu0 %v4217_v17  ;;  %v4340_v17 = vld [vmem:[#allocation6 + $0x60] sm:$0xff]  }
 0x198   :  { %2870 = vmatprep.subr.bf16.mxu0 %v4222_v18  ;;  %v4301_v18 = vld [vmem:[#allocation4 + $0x248] ss:$16 sps:$4 sm:$0xff]  }
 0x19b   :  { %2871 = vmatpush2.bf16.msra.mxu0 %v4220_v22  ;;  %v4341_v22 = vld [vmem:[#allocation6 + $0x20] sm:$0xff]  }
 0x19c   :  { %2872 = vmatprep.subr.bf16.mxu0 %v4225_v23  ;;  %v4306_v23 = vld [vmem:[#allocation4 + $0x22c] ss:$16 sps:$4 sm:$0xff]  }
 0x19f   :  { %2873 = vmatpush2.bf16.msra.mxu0 %v4223_v24  ;;  %v4342_v24 = vld [vmem:[#allocation6 + $0x58] sm:$0xff]  }
 0x1a0   :  { %2874 = vmatprep.subr.bf16.mxu0 %v4228_v25  ;;  %v4304_v25 = vld [vmem:[#allocation4 + $0x228] ss:$16 sps:$4 sm:$0xff]  }
 0x1a3   :  { %2875 = vmatpush2.bf16.msra.mxu0 %v4226_v28  ;;  %v4343_v28 = vld [vmem:[#allocation6 + $0x18] sm:$0xff]  }
 0x1a4   :  { %2876 = vmatprep.subr.bf16.mxu0 %v4231_v30  ;;  %v4309_v30 = vld [vmem:[#allocation4 + $0x20c] ss:$16 sps:$4 sm:$0xff]  }
 0x1a6   :  { %v1840_v38 = vpop.f32.mrf.mxu0 }
 0x1a7   :  { %v1881_v39 = vpop.f32.mrf.mxu1  ;;  %2877 = vmatpush2.bf16.msra.mxu0 %v4229_v33  ;;  %v1841_v46 = vadd.f32 %v1840_v38, %v353_v44  ;;  %v4344_v33 = vld [vmem:[#allocation6 + $0x50] sm:$0xff]   ;;  %v4327_v44 = vld [vmem:[#allocation4 + $0x34c] ss:$16 sps:$4 sm:$0xff]  }
 0x1a8   :  { %v1842_v49 = vpop.f32.mrf.mxu0  ;;  %2878 = vmatprep.subr.bf16.mxu0 %v4234_v36  ;;  %v4307_v36 = vld [vmem:[#allocation4 + $0x208] ss:$16 sps:$4 sm:$0xff]   ;;  %v4345_v38 = vld [vmem:[#allocation6 + $0x10] sm:$0xff]  }
 0x1a9   :  { %v1883_v9 = vpop.f32.mrf.mxu1  ;;  %v1843_v47 = vadd.f32 %v1842_v49, %v357_v45  ;;  %v1882_v48 = vadd.f32 %v1881_v39, %v1841_v46  ;;  %v4312_v39 = vld [vmem:[#allocation4 + $0x3ec] ss:$16 sps:$4 sm:$0xff]   ;;  %v4325_v45 = vld [vmem:[#allocation4 + $0x348] ss:$16 sps:$4 sm:$0xff]  }
 0x1aa   :  { %v1844_v20 = vpop.f32.mrf.mxu0  ;;  %v4315_v49 = vld [vmem:[#allocation4 + $0x3cc] ss:$16 sps:$4 sm:$0xff]  }
 0x1ab   :  { %v1885_v41 = vpop.f32.mrf.mxu1  ;;  %2879 = vmatpush2.bf16.msra.mxu0 %v4232_v8  ;;  %v1884_v51 = vadd.f32 %v1883_v9, %v1843_v47  ;;  %v4310_v8 = vld [vmem:[#allocation4 + $0x3e8] ss:$16 sps:$4 sm:$0xff]   ;;  %v4330_v46 = vld [vmem:[#allocation4 + $0x32c] ss:$16 sps:$4 sm:$0xff]  }
 0x1ac   :  { %v1845_v42 = vpop.f32.mrf.mxu0  ;;  %2880 = vmatprep.subr.bf16.mxu0 %v4237_v52  ;;  %v4313_v9 = vld [vmem:[#allocation4 + $0x3c8] ss:$16 sps:$4 sm:$0xff]   ;;  %v4318_v52 = vld [vmem:[#allocation4 + $0x3ac] ss:$16 sps:$4 sm:$0xff]  }
 0x1ad   :  { %v1886_v43 = vpop.f32.mrf.mxu1  ;;  %v4316_v20 = vld [vmem:[#allocation4 + $0x3a8] ss:$16 sps:$4 sm:$0xff]   ;;  %v4321_v41 = vld [vmem:[#allocation4 + $0x38c] ss:$16 sps:$4 sm:$0xff]  }
 0x1ae   :  { %v4324_v42 = vld [vmem:[#allocation4 + $0x36c] ss:$16 sps:$4 sm:$0xff]   ;;  %v4322_v43 = vld [vmem:[#allocation4 + $0x368] ss:$16 sps:$4 sm:$0xff]  }
 0x1af   :  { %2881 = vmatpush2.bf16.msra.mxu0 %v4235_v21  ;;  %v4319_v21 = vld [vmem:[#allocation4 + $0x388] ss:$16 sps:$4 sm:$0xff]  }
 0x1b0   :  { %3707 = vmatprep.subr.bf16.mxu0 %v4334_v5  ;;  %v4328_v47 = vld [vmem:[#allocation4 + $0x328] ss:$16 sps:$4 sm:$0xff]  }
 0x1b1   :  { %v4363_v5 = vld [vmem:[#allocation6 + $0x88] sm:$0xff]  }
 0x1b2   :  { %2883 = vmatmul.mubr.bf16.vlgmr.msra.gmra.mxu0 %v4569_v60 }
 0x1b3   :  { %3708 = vmatpush3.bf16.msra.mxu0 %v4335_v6 }
 0x1b4   :  { %3709 = vmatprep.subr.bf16.mxu0 %v4336_v7 }
 0x1b7   :  { %3710 = vmatpush3.bf16.msra.mxu0 %v4337_v11  ;;  %v4365_v11 = vld [vmem:[#allocation6 + $0x80] sm:$0xff]  }
 0x1b8   :  { %3711 = vmatprep.subr.bf16.mxu0 %v4338_v13  ;;  %v2106_v13 = vld [vmem:[%s4606_s4] sm:$0xf] }
 0x1bb   :  { %3712 = vmatpush3.bf16.msra.mxu0 %v4339_v15  ;;  %v2115_v15 = vrot.slane %v2106_v13, %v348_v29  ;;  %v2123_v29 = vrot.slane %v2106_v13, %v356_v40  ;;  %v3674_v40 = vld [vmem:[%s4608_s6] ss:$0 sm:$0xff] }
 0x1bc   :  { %3713 = vmatprep.subr.bf16.mxu0 %v4340_v17 }
 0x1bf   :  { %3714 = vmatpush3.bf16.msra.mxu0 %v4341_v22 }
 0x1c0   :  { %3715 = vmatprep.subr.bf16.mxu0 %v4342_v24 }
 0x1c3   :  { %3716 = vmatpush3.bf16.msra.mxu0 %v4343_v28 }
 0x1c4   :  { %3717 = vmatprep.subr.bf16.mxu0 %v4344_v33 }
 0x1c7   :  { %3718 = vmatpush3.bf16.msra.mxu0 %v4345_v38 }
 0x1e6   :  { %v1922_v31 = vpop.f32.mrf.mxu0 }
 0x1e7   :  { %v1963_v50 = vpop.f32.mrf.mxu1  ;;  %v1923_v53 = vadd.f32 %v1922_v31, %v1882_v48  ;;  %v4333_v48 = vld [vmem:[#allocation4 + $0x30c] ss:$16 sps:$4 sm:$0xff]   ;;  %v4331_v31 = vld [vmem:[#allocation4 + $0x308] ss:$16 sps:$4 sm:$0xff]  }
 0x1e8   :  { %v1924_v34 = vpop.f32.mrf.mxu0 }
 0x1e9   :  { %v1965_v54 = vpop.f32.mrf.mxu1  ;;  %v1964_v55 = vadd.f32 %v1963_v50, %v1923_v53  ;;  %v1925_v32 = vadd.f32 %v1924_v34, %v1884_v51  ;;  %v4346_v51 = vld [vmem:[#allocation6 + $0x48] sm:$0xff]  }
 0x1ea   :  { %v1926_v56 = vpop.f32.mrf.mxu0  ;;  %v4347_v34 = vld [vmem:[#allocation6 + $0x8] sm:$0xff]   ;;  %3719 = vmatprep.subr.bf16.mxu0 %v4346_v51 }
 0x1eb   :  { %v1967_v57 = vpop.f32.mrf.mxu1  ;;  %v1966_v58 = vadd.f32 %v1965_v54, %v1925_v32  ;;  %v1972_v35 = vmax.f32 %v1964_v55, 0.0  ;;  %3720 = vmatpush3.bf16.msra.mxu0 %v4347_v34  ;;  %v4348_v55 = vld [vmem:[#allocation6 + $0x40] sm:$0xff]  }
 0x1ec   :  { %v1927_v59 = vpop.f32.mrf.mxu0  ;;  %v4349_v56 = vld [vmem:[#allocation6] sm:$0xff]   ;;  %3721 = vmatprep.subr.bf16.mxu0 %v4348_v55  ;;  %v4350_v57 = vld [vmem:[#allocation6 + $0xf8] sm:$0xff]  }
 0x1ed   :  { %v1968_v60 = vpop.f32.mrf.mxu1  ;;  %v1973_v61 = vmax.f32 %v1966_v58, 0.0  ;;  %v4581_v63 = vpack.c.bf16 %v1972_v35, %v1972_v35  ;;  %v4351_v58 = vld [vmem:[#allocation6 + $0xb8] sm:$0xff]   ;;  %v4352_v35 = vld [vmem:[#allocation6 + $0xf0] sm:$0xff]  }
 0x1ee   :  { %v4353_v59 = vld [vmem:[#allocation6 + $0xb0] sm:$0xff]   ;;  %v4354_v60 = vld [vmem:[#allocation6 + $0xe8] sm:$0xff]  }
 0x1ef   :  { %v1977_v62 = vpack.c.bf16 %v1973_v61, %v1973_v61  ;;  %3722 = vmatpush3.bf16.msra.mxu0 %v4349_v56  ;;  %v4355_v61 = vld [vmem:[#allocation6 + $0xa8] sm:$0xff]  }
 0x1f1   :  { %2841 = vmatprep.mubr.bf16.mxu1 %v1977_v62 }
 0x1f2   :  { %2842 = vmatmul.mubr.bf16.vlgmr.msra.gmra.mxu1 %v4581_v63 }
 0x1f3   :  { %2892 = vmatpush1.bf16.msra.mxu1 %v4286_v27  ;;  %2923 = vmatprep.mubr.bf16.mxu1 %v1977_v62  ;;  %v4356_v62 = vld [vmem:[#allocation6 + $0xe0] sm:$0xff]  }
 0x1f4   :  { %2893 = vmatprep.subr.bf16.mxu1 %v4291_v0  ;;  %v4357_v27 = vld [vmem:[#allocation6 + $0xa0] sm:$0xff]   ;;  %v4359_v0 = vld [vmem:[#allocation6 + $0x98] sm:$0xff]  }
 0x1f7   :  { %2894 = vmatpush1.bf16.msra.mxu1 %v4289_v1  ;;  %v4360_v1 = vld [vmem:[#allocation6 + $0xd0] sm:$0xff]  }
 0x1f8   :  { %2895 = vmatprep.subr.bf16.mxu1 %v4294_v2  ;;  %v4361_v2 = vld [vmem:[#allocation6 + $0x90] sm:$0xff]  }
 0x1fb   :  { %2896 = vmatpush1.bf16.msra.mxu1 %v4292_v3 }
 0x1fc   :  { %2897 = vmatprep.subr.bf16.mxu1 %v4297_v4  ;;  %v4362_v4 = vld [vmem:[#allocation6 + $0xc8] sm:$0xff]  }
 0x1ff   :  { %2898 = vmatpush1.bf16.msra.mxu1 %v4295_v10  ;;  %v4364_v10 = vld [vmem:[#allocation6 + $0xc0] sm:$0xff]  }
 0x200   :  { %2899 = vmatprep.subr.bf16.mxu1 %v4300_v12 }
 0x203   :  { %2900 = vmatpush1.bf16.msra.mxu1 %v4298_v14  ;;  %v2111_v14 = vrot.slane %v2106_v13, %v344_v26  ;;  %v2119_v26 = vrot.slane %v2106_v13, %v352_v37 }
 0x204   :  { %2901 = vmatprep.subr.bf16.mxu1 %v4303_v16 }
 0x207   :  { %2902 = vmatpush1.bf16.msra.mxu1 %v4301_v18 }
 0x208   :  { %2903 = vmatprep.subr.bf16.mxu1 %v4306_v23 }
 0x20b   :  { %2904 = vmatpush1.bf16.msra.mxu1 %v4304_v25 }
 0x20c   :  { %2905 = vmatprep.subr.bf16.mxu1 %v4309_v30 }
 0x20f   :  { %2906 = vmatpush1.bf16.msra.mxu1 %v4307_v36 }
 0x210   :  { %2907 = vmatprep.subr.bf16.mxu1 %v4312_v39 }
 0x213   :  { %2908 = vmatpush2.bf16.msra.mxu1 %v4310_v8 }
 0x214   :  { %2909 = vmatprep.subr.bf16.mxu1 %v4315_v49 }
 0x217   :  { %2910 = vmatpush2.bf16.msra.mxu1 %v4313_v9 }
 0x218   :  { %2911 = vmatprep.subr.bf16.mxu1 %v4318_v52 }
 0x21b   :  { %2912 = vmatpush2.bf16.msra.mxu1 %v4316_v20 }
 0x21c   :  { %2913 = vmatprep.subr.bf16.mxu1 %v4321_v41 }
 0x21f   :  { %2914 = vmatpush2.bf16.msra.mxu1 %v4319_v21 }
 0x220   :  { %2915 = vmatprep.subr.bf16.mxu1 %v4324_v42 }
 0x223   :  { %2916 = vmatpush2.bf16.msra.mxu1 %v4322_v43 }
 0x224   :  { %2917 = vmatprep.subr.bf16.mxu1 %v4327_v44 }
 0x227   :  { %2918 = vmatpush2.bf16.msra.mxu1 %v4325_v45 }
 0x228   :  { %2919 = vmatprep.subr.bf16.mxu1 %v4330_v46 }
 0x22b   :  { %2920 = vmatpush2.bf16.msra.mxu1 %v4328_v47 }
 0x22c   :  { %2921 = vmatprep.subr.bf16.mxu1 %v4333_v48 }
 0x22f   :  { %2922 = vmatpush2.bf16.msra.mxu1 %v4331_v31 }
 0x230   :  { %3729 = vmatprep.subr.bf16.mxu1 %v4350_v57 }
 0x232   :  { %2924 = vmatmul.mubr.bf16.vlgmr.msra.gmra.mxu1 %v4581_v63  ;;  %v2802_v50 = vpop.f32.mrf.mxu0  ;;  %v4358_v63 = vld [vmem:[#allocation6 + $0xd8] sm:$0xff]  }
 0x233   :  { %3730 = vmatpush3.bf16.msra.mxu1 %v4351_v58  ;;  %v2803_v16 = vadd.f32 %v2802_v50, %v2111_v14 }
 0x234   :  { %v2804_v53 = vpop.f32.mrf.mxu0  ;;  %3731 = vmatprep.subr.bf16.mxu1 %v4352_v35 }
 0x235   :  { %v2805_v18 = vadd.f32 %v2804_v53, %v2115_v15 }
 0x236   :  { %v2806_v54 = vpop.f32.mrf.mxu0 }
 0x237   :  { %3732 = vmatpush3.bf16.msra.mxu1 %v4353_v59 }
 0x238   :  { %v2807_v32 = vpop.f32.mrf.mxu0  ;;  %3733 = vmatprep.subr.bf16.mxu1 %v4354_v60 }
 0x23b   :  { %3734 = vmatpush3.bf16.msra.mxu1 %v4355_v61 }
 0x23c   :  { %3735 = vmatprep.subr.bf16.mxu1 %v4356_v62 }
 0x23f   :  { %3736 = vmatpush3.bf16.msra.mxu1 %v4357_v27 }
 0x240   :  { %3737 = vmatprep.subr.bf16.mxu1 %v4358_v63 }
 0x243   :  { %3738 = vmatpush3.bf16.msra.mxu1 %v4359_v0 }
 0x244   :  { %3739 = vmatprep.subr.bf16.mxu1 %v4360_v1 }
 0x247   :  { %3740 = vmatpush3.bf16.msra.mxu1 %v4361_v2 }
 0x248   :  { %3741 = vmatprep.subr.bf16.mxu1 %v4362_v4 }
 0x24b   :  { %3742 = vmatpush3.bf16.msra.mxu1 %v4363_v5 }
 0x24c   :  { %3743 = vmatprep.subr.bf16.mxu1 %v4364_v10 }
 0x24f   :  { %3744 = vmatpush3.bf16.msra.mxu1 %v4365_v11 }
 0x272   :  { %v2884_v3 = vpop.f32.mrf.mxu0 }
 0x273   :  { %v2885_v39 = vadd.f32 %v2884_v3, %v2119_v26 }
 0x274   :  { %v2886_v6 = vpop.f32.mrf.mxu0 }
 0x275   :  { %v2887_v49 = vadd.f32 %v2886_v6, %v2123_v29 }
 0x276   :  { %v2888_v7 = vpop.f32.mrf.mxu0 }
 0x278   :  { %v2889_v12 = vpop.f32.mrf.mxu0 }
 0x2b2   :  { %v2843_v17 = vpop.f32.mrf.mxu1 }
 0x2b3   :  { %v2844_v22 = vadd.f32 %v2843_v17, %v2803_v16 }
 0x2b4   :  { %v2845_v23 = vpop.f32.mrf.mxu1 }
 0x2b5   :  { %v2846_v24 = vadd.f32 %v2845_v23, %v2805_v18  ;;  %v2932_v25 = vmax.f32 %v2844_v22, 0.0 }
 0x2b6   :  { %v2847_v28 = vpop.f32.mrf.mxu1 }
 0x2b7   :  { %v2933_v30 = vmax.f32 %v2846_v24, 0.0  ;;  %v2936_v38 = vpack.c.bf16 %v2932_v25, %v2932_v25 }
 0x2b8   :  { %v2848_v33 = vpop.f32.mrf.mxu1 }
 0x2b9   :  { %v2937_v36 = vpack.c.bf16 %v2933_v30, %v2933_v30 }
 0x2bb   :  { %3235 = vmatprep.mubr.bf16.mxu0 %v2937_v36 }
 0x2bc   :  { %3236 = vmatmul.mubr.bf16.vlgmr.msra.gmra.mxu0 %v2936_v38 }
 0x2f2   :  { %v2925_v8 = vpop.f32.mrf.mxu1 }
 0x2f3   :  { %v2926_v9 = vadd.f32 %v2925_v8, %v2885_v39 }
 0x2f4   :  { %v2927_v52 = vpop.f32.mrf.mxu1 }
 0x2f5   :  { %v2928_v20 = vadd.f32 %v2927_v52, %v2887_v49  ;;  %v2934_v41 = vmax.f32 %v2926_v9, 0.0 }
 0x2f6   :  { %v2929_v21 = vpop.f32.mrf.mxu1 }
 0x2f7   :  { %v2935_v42 = vmax.f32 %v2928_v20, 0.0  ;;  %v2938_v45 = vpack.c.bf16 %v2934_v41, %v2934_v41 }
 0x2f8   :  { %v2930_v43 = vpop.f32.mrf.mxu1 }
 0x2f9   :  { %v2939_v44 = vpack.c.bf16 %v2935_v42, %v2935_v42 }
 0x2fb   :  { %3275 = vmatprep.mubr.bf16.mxu1 %v2939_v44 }
 0x2fc   :  { %3276 = vmatmul.mubr.bf16.vlgmr.msra.gmra.mxu1 %v2938_v45 }
 0x37c   :  { %v3723_v46 = vpop.f32.mrf.mxu0 }
 0x37e   :  { %v3724_v47 = vpop.f32.mrf.mxu0 }
 0x37f   :  { %v3725_v19 = vadd.f32 %v3724_v47, %v3723_v46 }
 0x380   :  { %v3726_v37 = vpop.f32.mrf.mxu0 }
 0x381   :  { %v3238_v51 = vadd.f32 %v3725_v19, %v3674_v40 }
 0x382   :  { %v3727_v48 = vpop.f32.mrf.mxu0 }
 0x3bc   :  { %v3745_v31 = vpop.f32.mrf.mxu1 }
 0x3be   :  { %v3746_v50 = vpop.f32.mrf.mxu1 }
 0x3bf   :  { %v3747_v53 = vadd.f32 %v3746_v50, %v3745_v31 }
 0x3c0   :  { %v3748_v34 = vpop.f32.mrf.mxu1 }
 0x3c1   :  { %v3278_v54 = vadd.f32 %v3747_v53, %v3238_v51 }
 0x3c2   :  { %v3749_v55 = vpop.f32.mrf.mxu1 }
 0x3c3   :  { %3283 = vst [vmem:[%s4609_s7] sm:$0xff] %v3278_v54 }
 0x3c4   :  { %3288 = vsyncpa [#allocation3], 1 }
 0x3c5   :  { %3289 = vsyncpa [#allocation5], 1 }

</bundles_post_ra>
